<compile_context>
chip_gen: v7x
topology: tpu7x:2x2x1
jax: 0.10.0
libtpu: 0.0.40
codegen_flags: <defaults>
</compile_context>

<pallas_src>
import math
from functools import partial

import jax
import jax.numpy as jnp
from jax.experimental import pallas as pl
from jax.experimental.pallas import tpu as pltpu


# ----------------------------- in-kernel helpers -----------------------------

def _layernorm(x, g, eps=1e-5):
    """LayerNorm over last axis, weight only (bias=False).  x:(M,C) f32, g:(1,C)."""
    mu = jnp.mean(x, axis=-1, keepdims=True)
    xc = x - mu
    var = jnp.mean(xc * xc, axis=-1, keepdims=True)
    return xc * jax.lax.rsqrt(var + eps) * g


def _gelu_exact(x):
    """Exact (erf) GELU, matching torch.nn.GELU() default."""
    return 0.5 * x * (1.0 + jax.lax.erf(x * (1.0 / math.sqrt(2.0))))


def _largest_tile(n, cap, quantum):
    """Largest tile <= cap dividing n that is a multiple of quantum (or n itself)."""
    if n <= cap:
        return n
    t = (cap // quantum) * quantum
    while t >= quantum:
        if n % t == 0:
            return t
        t -= quantum
    return n


# --------------------------- fused transformer stack -------------------------

def _gpt_blocks_kernel(x_ref, ln1g_ref, wqkv_ref, wproj_ref, ln2g_ref,
                       wfc_ref, wmlp_ref, xout_ref, attnw_ref,
                       *, bsz, T, H, hd):
    """grid = (batch_block, layer).  One step == one transformer block applied
    to one batch block.  The residual stream is carried in xout_ref (same
    output block index across the layer axis -> stays resident in VMEM, written
    back to HBM once per batch block)."""
    l = pl.program_id(1)
    C = H * hd
    Mb = bsz * T

    @pl.when(l == 0)
    def _():
        xout_ref[...] = x_ref[...]

    x = xout_ref[...]                                        # (Mb, C) f32

    # ---- attention sub-block: LN1 -> c_attn -> causal MHA -> c_proj -> +res
    h1 = _layernorm(x, ln1g_ref[0])
    qkv = jnp.dot(h1.astype(jnp.bfloat16), wqkv_ref[0],
                  preferred_element_type=jnp.float32)        # (Mb, 3C) f32

    scale = 1.0 / math.sqrt(hd)
    row = jax.lax.broadcasted_iota(jnp.int32, (1, T, T), 1)
    col = jax.lax.broadcasted_iota(jnp.int32, (1, T, T), 2)
    causal = col <= row                                      # (1, T, T)

    outs = []        # per-head attention outputs, concatenated in registers
    prob_sums = []   # per-head batch-sums of attention probabilities (f32)
    for hh in range(H):                                      # static unroll
        q = qkv[:, hh * hd:(hh + 1) * hd].reshape(bsz, T, hd).astype(jnp.bfloat16)
        k = qkv[:, C + hh * hd:C + (hh + 1) * hd].reshape(bsz, T, hd).astype(jnp.bfloat16)
        v = qkv[:, 2 * C + hh * hd:2 * C + (hh + 1) * hd].reshape(bsz, T, hd).astype(jnp.bfloat16)

        s = jnp.einsum('btd,bsd->bts', q, k,
                       preferred_element_type=jnp.float32) * scale
        s = jnp.where(causal, s, -jnp.inf)                   # causal mask
        s = s - jnp.max(s, axis=-1, keepdims=True)
        p = jnp.exp(s)                                       # f32 softmax
        p = p / jnp.sum(p, axis=-1, keepdims=True)           # exact (matches torch)

        prob_sums.append(jnp.sum(p, axis=0))                 # (T, T) sum over block batches
        o = jnp.einsum('bts,bsd->btd', p.astype(jnp.bfloat16), v,
                       preferred_element_type=jnp.float32)   # (bsz, T, hd)
        outs.append(o.reshape(Mb, hd))

    # one full-block store of the attention-probability partial sums
    attnw_ref[...] = jnp.stack(prob_sums, axis=0).reshape(1, 1, H, T, T)

    attn_out = jnp.concatenate(outs, axis=-1)                # (Mb, C), registers only
    x = x + jnp.dot(attn_out.astype(jnp.bfloat16), wproj_ref[0],
                    preferred_element_type=jnp.float32)

    # NOTE: the reference also computes attn(ln_2(x)) and discards the result;
    # with dropout as identity that is dead compute and is skipped here.

    # ---- MLP sub-block: LN2 -> c_fc -> GELU -> c_proj -> +res
    h2 = _layernorm(x, ln2g_ref[0])
    m = jnp.dot(h2.astype(jnp.bfloat16), wfc_ref[0],
                preferred_element_type=jnp.float32)
    m = _gelu_exact(m)
    m = jnp.dot(m.astype(jnp.bfloat16), wmlp_ref[0],
                preferred_element_type=jnp.float32)
    xout_ref[...] = x + m


def gpt_blocks(x2d, dev, *, bsz, T, H, hd, n_layer, n_bb):
    C = H * hd
    M = x2d.shape[0]
    Mb = bsz * T
    kern = partial(_gpt_blocks_kernel, bsz=bsz, T=T, H=H, hd=hd)
    return pl.pallas_call(
        kern,
        out_shape=(jax.ShapeDtypeStruct((M, C), jnp.float32),
                   jax.ShapeDtypeStruct((n_layer, n_bb, H, T, T), jnp.float32)),
        grid=(n_bb, n_layer),
        in_specs=[
            pl.BlockSpec((Mb, C), lambda bb, l: (bb, 0)),            # residual init
            pl.BlockSpec((1, 1, C), lambda bb, l: (l, 0, 0)),        # ln1 gamma
            pl.BlockSpec((1, C, 3 * C), lambda bb, l: (l, 0, 0)),    # c_attn W^T (bf16)
            pl.BlockSpec((1, C, C), lambda bb, l: (l, 0, 0)),        # attn c_proj W^T
            pl.BlockSpec((1, 1, C), lambda bb, l: (l, 0, 0)),        # ln2 gamma
            pl.BlockSpec((1, C, 4 * C), lambda bb, l: (l, 0, 0)),    # c_fc W^T
            pl.BlockSpec((1, 4 * C, C), lambda bb, l: (l, 0, 0)),    # mlp c_proj W^T
        ],
        out_specs=(
            pl.BlockSpec((Mb, C), lambda bb, l: (bb, 0)),            # carried residual
            pl.BlockSpec((1, 1, H, T, T), lambda bb, l: (l, bb, 0, 0, 0)),
        ),
        input_output_aliases={0: 0},                                 # x2d aliases residual out
        compiler_params=pltpu.CompilerParams(
            dimension_semantics=("parallel", "arbitrary"),           # batch blocks || ; layers seq.
            vmem_limit_bytes=64 * 1024 * 1024),
    )(x2d, dev["ln1_g"], dev["wqkv"], dev["wproj"], dev["ln2_g"],
      dev["wfc"], dev["wmlp"])


# ----------------------------- ln_f + tied lm_head ----------------------------

def _lnf_head_kernel(x_ref, g_ref, w_ref, o_ref):
    h = _layernorm(x_ref[...], g_ref[...])
    o_ref[...] = jnp.dot(h.astype(jnp.bfloat16), w_ref[...],
                         preferred_element_type=jnp.float32).astype(o_ref.dtype)


def lnf_head(x2d, gamma, w_pad, *, row_tile, vocab_tile):
    M, C = x2d.shape
    Vp = w_pad.shape[1]
    return pl.pallas_call(
        _lnf_head_kernel,
        out_shape=jax.ShapeDtypeStruct((M, Vp), jnp.float32),
        grid=(M // row_tile, Vp // vocab_tile),
        in_specs=[
            pl.BlockSpec((row_tile, C), lambda i, j: (i, 0)),
            pl.BlockSpec((1, C), lambda i, j: (0, 0)),
            pl.BlockSpec((C, vocab_tile), lambda i, j: (0, j)),      # vocab-tiled weight
        ],
        out_specs=pl.BlockSpec((row_tile, vocab_tile), lambda i, j: (i, j)),
        compiler_params=pltpu.CompilerParams(
            dimension_semantics=("parallel", "parallel"),
            vmem_limit_bytes=64 * 1024 * 1024),
    )(x2d, gamma, w_pad)


# -------------------------------- model setup --------------------------------

CFG = dict(n_layer=2, n_head=4, n_embd=128, block_size=16, vocab_size=16,
           bias=False, dropout=0.2)  # dropout treated as identity (see TODO above)


def init_params(key, cfg):
    """PyTorch layouts: embeddings (num, C); Linear weights (out, in)."""
    C = cfg["n_embd"]
    V = cfg["vocab_size"]
    L = cfg["n_layer"]
    std = 0.02
    proj_std = 0.02 / math.sqrt(2 * L)
    keys = iter(jax.random.split(key, 2 + 4 * L))

    def normal(shape, s):
        return (s * jax.random.normal(next(keys), shape)).astype(jnp.float32)

    params = {
        "wte": normal((V, C), std),                    # tied with lm_head
        "wpe": normal((cfg["block_size"], C), std),
        "lnf_g": jnp.ones((C,), jnp.float32),
        "layers": [],
    }
    for _ in range(L):
        params["layers"].append({
            "ln1_g": jnp.ones((C,), jnp.float32),
            "c_attn_w": normal((3 * C, C), std),
            "attn_proj_w": normal((C, C), proj_std),
            "ln2_g": jnp.ones((C,), jnp.float32),
            "c_fc_w": normal((4 * C, C), std),
            "mlp_proj_w": normal((C, 4 * C), proj_std),
        })
    return params


def prepare_params(params, cfg):
    """Transpose to (in,out), stack per-layer, cast weights to bf16 for the MXU,
    pad tied lm_head weight to a lane-dense (C, multiple-of-128) slab."""
    C = cfg["n_embd"]
    L = cfg["n_layer"]
    V = cfg["vocab_size"]
    layers = params["layers"]
    Vp = ((V + 127) // 128) * 128
    head = jnp.zeros((C, Vp), jnp.float32).at[:, :V].set(params["wte"].T)
    return {
        "wte": params["wte"],                                          # f32 (gather)
        "wpe": params["wpe"],
        "ln1_g": jnp.stack([lp["ln1_g"] for lp in layers]).reshape(L, 1, C),
        "ln2_g": jnp.stack([lp["ln2_g"] for lp in layers]).reshape(L, 1, C),
        "wqkv": jnp.stack([lp["c_attn_w"].T for lp in layers]).astype(jnp.bfloat16),
        "wproj": jnp.stack([lp["attn_proj_w"].T for lp in layers]).astype(jnp.bfloat16),
        "wfc": jnp.stack([lp["c_fc_w"].T for lp in layers]).astype(jnp.bfloat16),
        "wmlp": jnp.stack([lp["mlp_proj_w"].T for lp in layers]).astype(jnp.bfloat16),
        "lnf_g": params["lnf_g"].reshape(1, C),
        "head_w": head.astype(jnp.bfloat16),                           # (C, Vp)
    }


def gpt_forward(dev, idx, cfg):
    B, T = idx.shape
    C = cfg["n_embd"]
    H = cfg["n_head"]
    hd = C // H
    L = cfg["n_layer"]
    V = cfg["vocab_size"]

    # embeddings (+ identity dropout) -- gather kept in plain JAX glue
    x = jnp.take(dev["wte"], idx, axis=0) + dev["wpe"][:T][None]       # (B,T,C)
    x2d = x.astype(jnp.float32).reshape(B * T, C)

    # batch blocks: 2 blocks when possible so both v7x TensorCores are used
    n_bb = 2 if (B >= 2 and B % 2 == 0) else 1
    bsz = B // n_bb

    # whole transformer stack in one kernel
    xf, attn_raw = gpt_blocks(x2d, dev, bsz=bsz, T=T, H=H, hd=hd,
                              n_layer=L, n_bb=n_bb)

    # ln_f + tied lm_head (lane-dense padded output, sliced back here)
    M = B * T
    row_tile = _largest_tile(M, 512, 8)
    Vp = dev["head_w"].shape[1]
    vocab_tile = _largest_tile(Vp, 512, 128)
    logits_pad = lnf_head(xf, dev["lnf_g"], dev["head_w"],
                          row_tile=row_tile, vocab_tile=vocab_tile)
    logits = logits_pad[:, :V].reshape(B, T, V)

    # finish batch mean of attention probabilities across batch blocks
    attn_mean = attn_raw.sum(axis=1) / B                               # (L, H, T, T)
    attn_weights = [attn_mean[l] for l in range(L)]
    loss = None                                                        # targets=None path
    return logits, loss, attn_weights


# ----------------------------------- main -------------------------------------

if __name__ == "__main__":
    key = jax.random.PRNGKey(0)
    pkey, dkey = jax.random.split(key)
    params = init_params(pkey, CFG)
    dev = prepare_params(params, CFG)

    B, T = 2, 8
    idx = jax.random.randint(dkey, (B, T), 0, CFG["vocab_size"], dtype=jnp.int32)

    fwd = jax.jit(lambda d, i: gpt_forward(d, i, CFG))
    logits, loss, attn_weights = fwd(dev, idx)
    jax.block_until_ready((logits, attn_weights))

    assert logits.shape == (B, T, CFG["vocab_size"])
    assert loss is None
    assert len(attn_weights) == CFG["n_layer"]
    assert attn_weights[0].shape == (CFG["n_head"], T, T)
    assert bool(jnp.all(jnp.isfinite(logits)))
    print("KERNEL_OK")
</pallas_src>

<mosaic_0001>
module attributes {stable_mosaic.version = 11 : i64} {
  func.func @_lnf_head_kernel(%arg0: i32, %arg1: i32, %arg2: memref<16x128xf32, #tpu.memory_space<vmem>>, %arg3: memref<1x128xf32, #tpu.memory_space<vmem>>, %arg4: memref<128x128xbf16, #tpu.memory_space<vmem>>, %arg5: memref<16x128xf32, #tpu.memory_space<vmem>>) attributes {dimension_semantics = [#tpu.dimension_semantics<parallel>, #tpu.dimension_semantics<parallel>], iteration_bounds = array<i64: 1, 1>, scalar_prefetch = 0 : i64, scratch_operands = 0 : i64, tpu.core_type = #tpu.core_type<tc>, window_params = [{transform_indices = @transform_0, window_bounds = array<i64: 16, 128>}, {pipeline_mode = #tpu.pipeline_mode<synchronous>, transform_indices = @transform_1, window_bounds = array<i64: 1, 128>}, {transform_indices = @transform_2, window_bounds = array<i64: 128, 128>}, {transform_indices = @transform_3, window_bounds = array<i64: 16, 128>}]} {
    %c0 = arith.constant 0 : index
    %c0_0 = arith.constant 0 : index
    %0 = vector.load %arg2[%c0, %c0_0] : memref<16x128xf32, #tpu.memory_space<vmem>>, vector<16x128xf32>
    %c0_1 = arith.constant 0 : index
    %c0_2 = arith.constant 0 : index
    %1 = vector.load %arg3[%c0_1, %c0_2] : memref<1x128xf32, #tpu.memory_space<vmem>>, vector<1x128xf32>
    %cst = arith.constant dense<0.000000e+00> : vector<16xf32>
    %2 = vector.multi_reduction <add>, %0, %cst [1] : vector<16x128xf32> to vector<16xf32>
    %3 = vector.shape_cast %2 : vector<16xf32> to vector<16x1xf32>
    %cst_3 = arith.constant 1.280000e+02 : f32
    %4 = vector.broadcast %cst_3 : f32 to vector<16x1xf32>
    %5 = arith.divf %3, %4 : vector<16x1xf32>
    %6 = vector.broadcast %5 : vector<16x1xf32> to vector<16x128xf32>
    %7 = arith.subf %0, %6 : vector<16x128xf32>
    %8 = arith.mulf %7, %7 : vector<16x128xf32>
    %cst_4 = arith.constant dense<0.000000e+00> : vector<16xf32>
    %9 = vector.multi_reduction <add>, %8, %cst_4 [1] : vector<16x128xf32> to vector<16xf32>
    %10 = vector.shape_cast %9 : vector<16xf32> to vector<16x1xf32>
    %cst_5 = arith.constant 1.280000e+02 : f32
    %11 = vector.broadcast %cst_5 : f32 to vector<16x1xf32>
    %12 = arith.divf %10, %11 : vector<16x1xf32>
    %cst_6 = arith.constant 9.99999974E-6 : f32
    %13 = vector.broadcast %cst_6 : f32 to vector<16x1xf32>
    %14 = arith.addf %12, %13 : vector<16x1xf32>
    %15 = math.rsqrt %14 : vector<16x1xf32>
    %16 = vector.broadcast %15 : vector<16x1xf32> to vector<16x128xf32>
    %17 = arith.mulf %7, %16 : vector<16x128xf32>
    %18 = vector.broadcast %1 : vector<1x128xf32> to vector<16x128xf32>
    %19 = arith.mulf %17, %18 : vector<16x128xf32>
    %20 = arith.truncf %19 : vector<16x128xf32> to vector<16x128xbf16>
    %c0_7 = arith.constant 0 : index
    %c0_8 = arith.constant 0 : index
    %21 = vector.load %arg4[%c0_7, %c0_8] : memref<128x128xbf16, #tpu.memory_space<vmem>>, vector<128x128xbf16>
    %cst_9 = arith.constant dense<0.000000e+00> : vector<16x128xf32>
    %22 = tpu.matmul %20, %21, %cst_9 {dimension_numbers = #tpu.dot_dimension_numbers<[1], [0], [0], [1], [0, 0, 1, 1], [], []>} : vector<16x128xbf16>, vector<128x128xbf16>, vector<16x128xf32> -> vector<16x128xf32>
    %c0_10 = arith.constant 0 : index
    %c0_11 = arith.constant 0 : index
    %23 = vector.load %arg5[%c0_10, %c0_11] : memref<16x128xf32, #tpu.memory_space<vmem>>, vector<16x128xf32>
    tpu.vector_store %arg5[%c0_10, %c0_11], %22 {strides = array<i32>} : memref<16x128xf32, #tpu.memory_space<vmem>>, vector<16x128xf32>,
    return
  }
  func.func @transform_0(%arg0: i32, %arg1: i32) -> (i32, i32) {
    %c0_i32 = arith.constant 0 : i32
    %c0_i32_0 = arith.constant 0 : i32
    return %arg0, %c0_i32 : i32, i32
  }
  func.func @transform_1(%arg0: i32, %arg1: i32) -> (i32, i32) {
    %c0_i32 = arith.constant 0 : i32
    %c0_i32_0 = arith.constant 0 : i32
    %c0_i32_1 = arith.constant 0 : i32
    return %c0_i32, %c0_i32_0 : i32, i32
  }
  func.func @transform_2(%arg0: i32, %arg1: i32) -> (i32, i32) {
    %c0_i32 = arith.constant 0 : i32
    %c0_i32_0 = arith.constant 0 : i32
    return %c0_i32, %arg1 : i32, i32
  }
  func.func @transform_3(%arg0: i32, %arg1: i32) -> (i32, i32) {
    %c0_i32 = arith.constant 0 : i32
    return %arg0, %arg1 : i32, i32
  }
}

module attributes {stable_mosaic.version = 11 : i64} {
  func.func @_gpt_blocks_kernel(%arg0: i32, %arg1: i32, %arg2: memref<8x128xf32, #tpu.memory_space<vmem>>, %arg3: memref<1x1x128xf32, #tpu.memory_space<vmem>>, %arg4: memref<1x128x384xbf16, #tpu.memory_space<vmem>>, %arg5: memref<1x128x128xbf16, #tpu.memory_space<vmem>>, %arg6: memref<1x1x128xf32, #tpu.memory_space<vmem>>, %arg7: memref<1x128x512xbf16, #tpu.memory_space<vmem>>, %arg8: memref<1x512x128xbf16, #tpu.memory_space<vmem>>, %arg9: memref<8x128xf32, #tpu.memory_space<vmem>>, %arg10: memref<1x1x4x8x8xf32, #tpu.memory_space<vmem>>) attributes {dimension_semantics = [#tpu.dimension_semantics<parallel>, #tpu.dimension_semantics<arbitrary>], iteration_bounds = array<i64: 2, 2>, scalar_prefetch = 0 : i64, scratch_operands = 0 : i64, tpu.core_type = #tpu.core_type<tc>, window_params = [{transform_indices = @transform_0, window_bounds = array<i64: 8, 128>}, {transform_indices = @transform_1, window_bounds = array<i64: 1, 1, 128>}, {transform_indices = @transform_2, window_bounds = array<i64: 1, 128, 384>}, {transform_indices = @transform_3, window_bounds = array<i64: 1, 128, 128>}, {transform_indices = @transform_4, window_bounds = array<i64: 1, 1, 128>}, {transform_indices = @transform_5, window_bounds = array<i64: 1, 128, 512>}, {transform_indices = @transform_6, window_bounds = array<i64: 1, 512, 128>}, {transform_indices = @transform_7, window_bounds = array<i64: 8, 128>}, {transform_indices = @transform_8, window_bounds = array<i64: 1, 1, 4, 8, 8>}]} {
    %c0_i32 = arith.constant 0 : i32
    %0 = arith.cmpi eq, %arg1, %c0_i32 : i32
    %1 = arith.extui %0 : i1 to i32
    %c0_i32_0 = arith.constant 0 : i32
    %2 = arith.cmpi ne, %1, %c0_i32_0 : i32
    scf.if %2 {
      %c0_71 = arith.constant 0 : index
      %c0_72 = arith.constant 0 : index
      %190 = vector.load %arg2[%c0_71, %c0_72] : memref<8x128xf32, #tpu.memory_space<vmem>>, vector<8x128xf32>
      %c0_73 = arith.constant 0 : index
      %c0_74 = arith.constant 0 : index
      %191 = vector.load %arg9[%c0_73, %c0_74] : memref<8x128xf32, #tpu.memory_space<vmem>>, vector<8x128xf32>
      tpu.vector_store %arg9[%c0_73, %c0_74], %190 {strides = array<i32>} : memref<8x128xf32, #tpu.memory_space<vmem>>, vector<8x128xf32>,
    } else {
    }
    %c0 = arith.constant 0 : index
    %c0_1 = arith.constant 0 : index
    %3 = vector.load %arg9[%c0, %c0_1] : memref<8x128xf32, #tpu.memory_space<vmem>>, vector<8x128xf32>
    %c0_2 = arith.constant 0 : index
    %c0_3 = arith.constant 0 : index
    %c0_4 = arith.constant 0 : index
    %4 = vector.load %arg3[%c0_2, %c0_3, %c0_4] : memref<1x1x128xf32, #tpu.memory_space<vmem>>, vector<1x1x128xf32>
    %5 = vector.shape_cast %4 : vector<1x1x128xf32> to vector<1x128xf32>
    %cst = arith.constant dense<0.000000e+00> : vector<8xf32>
    %6 = vector.multi_reduction <add>, %3, %cst [1] : vector<8x128xf32> to vector<8xf32>
    %7 = vector.shape_cast %6 : vector<8xf32> to vector<8x1xf32>
    %cst_5 = arith.constant 1.280000e+02 : f32
    %8 = vector.broadcast %cst_5 : f32 to vector<8x1xf32>
    %9 = arith.divf %7, %8 : vector<8x1xf32>
    %10 = vector.broadcast %9 : vector<8x1xf32> to vector<8x128xf32>
    %11 = arith.subf %3, %10 : vector<8x128xf32>
    %12 = arith.mulf %11, %11 : vector<8x128xf32>
    %cst_6 = arith.constant dense<0.000000e+00> : vector<8xf32>
    %13 = vector.multi_reduction <add>, %12, %cst_6 [1] : vector<8x128xf32> to vector<8xf32>
    %14 = vector.shape_cast %13 : vector<8xf32> to vector<8x1xf32>
    %cst_7 = arith.constant 1.280000e+02 : f32
    %15 = vector.broadcast %cst_7 : f32 to vector<8x1xf32>
    %16 = arith.divf %14, %15 : vector<8x1xf32>
    %cst_8 = arith.constant 9.99999974E-6 : f32
    %17 = vector.broadcast %cst_8 : f32 to vector<8x1xf32>
    %18 = arith.addf %16, %17 : vector<8x1xf32>
    %19 = math.rsqrt %18 : vector<8x1xf32>
    %20 = vector.broadcast %19 : vector<8x1xf32> to vector<8x128xf32>
    %21 = arith.mulf %11, %20 : vector<8x128xf32>
    %22 = vector.broadcast %5 : vector<1x128xf32> to vector<8x128xf32>
    %23 = arith.mulf %21, %22 : vector<8x128xf32>
    %24 = arith.truncf %23 : vector<8x128xf32> to vector<8x128xbf16>
    %c0_9 = arith.constant 0 : index
    %c0_10 = arith.constant 0 : index
    %c0_11 = arith.constant 0 : index
    %25 = vector.load %arg4[%c0_9, %c0_10, %c0_11] : memref<1x128x384xbf16, #tpu.memory_space<vmem>>, vector<1x128x384xbf16>
    %26 = vector.shape_cast %25 : vector<1x128x384xbf16> to vector<128x384xbf16>
    %cst_12 = arith.constant dense<0.000000e+00> : vector<8x384xf32>
    %27 = tpu.matmul %24, %26, %cst_12 {dimension_numbers = #tpu.dot_dimension_numbers<[1], [0], [0], [1], [0, 0, 1, 1], [], []>} : vector<8x128xbf16>, vector<128x384xbf16>, vector<8x384xf32> -> vector<8x384xf32>
    %28 = tpu.iota {dimensions = array<i32: 1>} : vector<1x8x8xi32>
    %29 = tpu.iota {dimensions = array<i32: 2>} : vector<1x8x8xi32>
    %30 = arith.cmpi sle, %29, %28 : vector<1x8x8xi32>
    %31 = vector.extract_strided_slice %27 {offsets = [0, 0], sizes = [8, 32], strides = [1, 1]} : vector<8x384xf32> to vector<8x32xf32>
    %32 = vector.shape_cast %31 : vector<8x32xf32> to vector<1x8x32xf32>
    %33 = arith.truncf %32 : vector<1x8x32xf32> to vector<1x8x32xbf16>
    %34 = vector.extract_strided_slice %27 {offsets = [0, 128], sizes = [8, 32], strides = [1, 1]} : vector<8x384xf32> to vector<8x32xf32>
    %35 = vector.shape_cast %34 : vector<8x32xf32> to vector<1x8x32xf32>
    %36 = arith.truncf %35 : vector<1x8x32xf32> to vector<1x8x32xbf16>
    %37 = vector.extract_strided_slice %27 {offsets = [0, 256], sizes = [8, 32], strides = [1, 1]} : vector<8x384xf32> to vector<8x32xf32>
    %38 = vector.shape_cast %37 : vector<8x32xf32> to vector<1x8x32xf32>
    %39 = arith.truncf %38 : vector<1x8x32xf32> to vector<1x8x32xbf16>
    "tpu.trace_start"() <{level = 10 : i32, message = "btd,bsd->bts"}> : () -> ()
    %cst_13 = arith.constant dense<0.000000e+00> : vector<1x8x8xf32>
    %40 = tpu.matmul %33, %36, %cst_13 {dimension_numbers = #tpu.dot_dimension_numbers<[2], [2], [1], [1], [0, 0, 0, 1, 1, 1], [0], [0]>} : vector<1x8x32xbf16>, vector<1x8x32xbf16>, vector<1x8x8xf32> -> vector<1x8x8xf32>
    "tpu.trace_stop"() : () -> ()
    %cst_14 = arith.constant 0.176776692 : f32
    %41 = vector.broadcast %cst_14 : f32 to vector<1x8x8xf32>
    %42 = arith.mulf %40, %41 : vector<1x8x8xf32>
    %cst_15 = arith.constant 0xFF800000 : f32
    %43 = vector.broadcast %cst_15 : f32 to vector<1x8x8xf32>
    %44 = arith.select %30, %42, %43 : vector<1x8x8xi1>, vector<1x8x8xf32>
    %cst_16 = arith.constant dense<0xFF800000> : vector<1x8xf32>
    %45 = vector.multi_reduction <maximumf>, %44, %cst_16 [2] : vector<1x8x8xf32> to vector<1x8xf32>
    %46 = vector.shape_cast %45 : vector<1x8xf32> to vector<1x8x1xf32>
    %47 = vector.broadcast %46 : vector<1x8x1xf32> to vector<1x8x8xf32>
    %48 = arith.subf %44, %47 : vector<1x8x8xf32>
    %49 = math.exp %48 : vector<1x8x8xf32>
    %cst_17 = arith.constant dense<0.000000e+00> : vector<1x8xf32>
    %50 = vector.multi_reduction <add>, %49, %cst_17 [2] : vector<1x8x8xf32> to vector<1x8xf32>
    %51 = vector.shape_cast %50 : vector<1x8xf32> to vector<1x8x1xf32>
    %52 = vector.broadcast %51 : vector<1x8x1xf32> to vector<1x8x8xf32>
    %53 = arith.divf %49, %52 : vector<1x8x8xf32>
    %cst_18 = arith.constant dense<0.000000e+00> : vector<8x8xf32>
    %54 = vector.multi_reduction <add>, %53, %cst_18 [0] : vector<1x8x8xf32> to vector<8x8xf32>
    %55 = arith.truncf %53 : vector<1x8x8xf32> to vector<1x8x8xbf16>
    "tpu.trace_start"() <{level = 10 : i32, message = "bts,bsd->btd"}> : () -> ()
    %cst_19 = arith.constant dense<0.000000e+00> : vector<1x8x32xf32>
    %56 = tpu.matmul %55, %39, %cst_19 {dimension_numbers = #tpu.dot_dimension_numbers<[2], [1], [1], [2], [0, 0, 0, 1, 1, 2], [0], [0]>} : vector<1x8x8xbf16>, vector<1x8x32xbf16>, vector<1x8x32xf32> -> vector<1x8x32xf32>
    "tpu.trace_stop"() : () -> ()
    %57 = vector.shape_cast %56 : vector<1x8x32xf32> to vector<8x32xf32>
    %58 = vector.extract_strided_slice %27 {offsets = [0, 32], sizes = [8, 32], strides = [1, 1]} : vector<8x384xf32> to vector<8x32xf32>
    %59 = vector.shape_cast %58 : vector<8x32xf32> to vector<1x8x32xf32>
    %60 = arith.truncf %59 : vector<1x8x32xf32> to vector<1x8x32xbf16>
    %61 = vector.extract_strided_slice %27 {offsets = [0, 160], sizes = [8, 32], strides = [1, 1]} : vector<8x384xf32> to vector<8x32xf32>
    %62 = vector.shape_cast %61 : vector<8x32xf32> to vector<1x8x32xf32>
    %63 = arith.truncf %62 : vector<1x8x32xf32> to vector<1x8x32xbf16>
    %64 = vector.extract_strided_slice %27 {offsets = [0, 288], sizes = [8, 32], strides = [1, 1]} : vector<8x384xf32> to vector<8x32xf32>
    %65 = vector.shape_cast %64 : vector<8x32xf32> to vector<1x8x32xf32>
    %66 = arith.truncf %65 : vector<1x8x32xf32> to vector<1x8x32xbf16>
    "tpu.trace_start"() <{level = 10 : i32, message = "btd,bsd->bts"}> : () -> ()
    %cst_20 = arith.constant dense<0.000000e+00> : vector<1x8x8xf32>
    %67 = tpu.matmul %60, %63, %cst_20 {dimension_numbers = #tpu.dot_dimension_numbers<[2], [2], [1], [1], [0, 0, 0, 1, 1, 1], [0], [0]>} : vector<1x8x32xbf16>, vector<1x8x32xbf16>, vector<1x8x8xf32> -> vector<1x8x8xf32>
    "tpu.trace_stop"() : () -> ()
    %cst_21 = arith.constant 0.176776692 : f32
    %68 = vector.broadcast %cst_21 : f32 to vector<1x8x8xf32>
    %69 = arith.mulf %67, %68 : vector<1x8x8xf32>
    %cst_22 = arith.constant 0xFF800000 : f32
    %70 = vector.broadcast %cst_22 : f32 to vector<1x8x8xf32>
    %71 = arith.select %30, %69, %70 : vector<1x8x8xi1>, vector<1x8x8xf32>
    %cst_23 = arith.constant dense<0xFF800000> : vector<1x8xf32>
    %72 = vector.multi_reduction <maximumf>, %71, %cst_23 [2] : vector<1x8x8xf32> to vector<1x8xf32>
    %73 = vector.shape_cast %72 : vector<1x8xf32> to vector<1x8x1xf32>
    %74 = vector.broadcast %73 : vector<1x8x1xf32> to vector<1x8x8xf32>
    %75 = arith.subf %71, %74 : vector<1x8x8xf32>
    %76 = math.exp %75 : vector<1x8x8xf32>
    %cst_24 = arith.constant dense<0.000000e+00> : vector<1x8xf32>
    %77 = vector.multi_reduction <add>, %76, %cst_24 [2] : vector<1x8x8xf32> to vector<1x8xf32>
    %78 = vector.shape_cast %77 : vector<1x8xf32> to vector<1x8x1xf32>
    %79 = vector.broadcast %78 : vector<1x8x1xf32> to vector<1x8x8xf32>
    %80 = arith.divf %76, %79 : vector<1x8x8xf32>
    %cst_25 = arith.constant dense<0.000000e+00> : vector<8x8xf32>
    %81 = vector.multi_reduction <add>, %80, %cst_25 [0] : vector<1x8x8xf32> to vector<8x8xf32>
    %82 = arith.truncf %80 : vector<1x8x8xf32> to vector<1x8x8xbf16>
    "tpu.trace_start"() <{level = 10 : i32, message = "bts,bsd->btd"}> : () -> ()
    %cst_26 = arith.constant dense<0.000000e+00> : vector<1x8x32xf32>
    %83 = tpu.matmul %82, %66, %cst_26 {dimension_numbers = #tpu.dot_dimension_numbers<[2], [1], [1], [2], [0, 0, 0, 1, 1, 2], [0], [0]>} : vector<1x8x8xbf16>, vector<1x8x32xbf16>, vector<1x8x32xf32> -> vector<1x8x32xf32>
    "tpu.trace_stop"() : () -> ()
    %84 = vector.shape_cast %83 : vector<1x8x32xf32> to vector<8x32xf32>
    %85 = vector.extract_strided_slice %27 {offsets = [0, 64], sizes = [8, 32], strides = [1, 1]} : vector<8x384xf32> to vector<8x32xf32>
    %86 = vector.shape_cast %85 : vector<8x32xf32> to vector<1x8x32xf32>
    %87 = arith.truncf %86 : vector<1x8x32xf32> to vector<1x8x32xbf16>
    %88 = vector.extract_strided_slice %27 {offsets = [0, 192], sizes = [8, 32], strides = [1, 1]} : vector<8x384xf32> to vector<8x32xf32>
    %89 = vector.shape_cast %88 : vector<8x32xf32> to vector<1x8x32xf32>
    %90 = arith.truncf %89 : vector<1x8x32xf32> to vector<1x8x32xbf16>
    %91 = vector.extract_strided_slice %27 {offsets = [0, 320], sizes = [8, 32], strides = [1, 1]} : vector<8x384xf32> to vector<8x32xf32>
    %92 = vector.shape_cast %91 : vector<8x32xf32> to vector<1x8x32xf32>
    %93 = arith.truncf %92 : vector<1x8x32xf32> to vector<1x8x32xbf16>
    "tpu.trace_start"() <{level = 10 : i32, message = "btd,bsd->bts"}> : () -> ()
    %cst_27 = arith.constant dense<0.000000e+00> : vector<1x8x8xf32>
    %94 = tpu.matmul %87, %90, %cst_27 {dimension_numbers = #tpu.dot_dimension_numbers<[2], [2], [1], [1], [0, 0, 0, 1, 1, 1], [0], [0]>} : vector<1x8x32xbf16>, vector<1x8x32xbf16>, vector<1x8x8xf32> -> vector<1x8x8xf32>
    "tpu.trace_stop"() : () -> ()
    %cst_28 = arith.constant 0.176776692 : f32
    %95 = vector.broadcast %cst_28 : f32 to vector<1x8x8xf32>
    %96 = arith.mulf %94, %95 : vector<1x8x8xf32>
    %cst_29 = arith.constant 0xFF800000 : f32
    %97 = vector.broadcast %cst_29 : f32 to vector<1x8x8xf32>
    %98 = arith.select %30, %96, %97 : vector<1x8x8xi1>, vector<1x8x8xf32>
    %cst_30 = arith.constant dense<0xFF800000> : vector<1x8xf32>
    %99 = vector.multi_reduction <maximumf>, %98, %cst_30 [2] : vector<1x8x8xf32> to vector<1x8xf32>
    %100 = vector.shape_cast %99 : vector<1x8xf32> to vector<1x8x1xf32>
    %101 = vector.broadcast %100 : vector<1x8x1xf32> to vector<1x8x8xf32>
    %102 = arith.subf %98, %101 : vector<1x8x8xf32>
    %103 = math.exp %102 : vector<1x8x8xf32>
    %cst_31 = arith.constant dense<0.000000e+00> : vector<1x8xf32>
    %104 = vector.multi_reduction <add>, %103, %cst_31 [2] : vector<1x8x8xf32> to vector<1x8xf32>
    %105 = vector.shape_cast %104 : vector<1x8xf32> to vector<1x8x1xf32>
    %106 = vector.broadcast %105 : vector<1x8x1xf32> to vector<1x8x8xf32>
    %107 = arith.divf %103, %106 : vector<1x8x8xf32>
    %cst_32 = arith.constant dense<0.000000e+00> : vector<8x8xf32>
    %108 = vector.multi_reduction <add>, %107, %cst_32 [0] : vector<1x8x8xf32> to vector<8x8xf32>
    %109 = arith.truncf %107 : vector<1x8x8xf32> to vector<1x8x8xbf16>
    "tpu.trace_start"() <{level = 10 : i32, message = "bts,bsd->btd"}> : () -> ()
    %cst_33 = arith.constant dense<0.000000e+00> : vector<1x8x32xf32>
    %110 = tpu.matmul %109, %93, %cst_33 {dimension_numbers = #tpu.dot_dimension_numbers<[2], [1], [1], [2], [0, 0, 0, 1, 1, 2], [0], [0]>} : vector<1x8x8xbf16>, vector<1x8x32xbf16>, vector<1x8x32xf32> -> vector<1x8x32xf32>
    "tpu.trace_stop"() : () -> ()
    %111 = vector.shape_cast %110 : vector<1x8x32xf32> to vector<8x32xf32>
    %112 = vector.extract_strided_slice %27 {offsets = [0, 96], sizes = [8, 32], strides = [1, 1]} : vector<8x384xf32> to vector<8x32xf32>
    %113 = vector.shape_cast %112 : vector<8x32xf32> to vector<1x8x32xf32>
    %114 = arith.truncf %113 : vector<1x8x32xf32> to vector<1x8x32xbf16>
    %115 = vector.extract_strided_slice %27 {offsets = [0, 224], sizes = [8, 32], strides = [1, 1]} : vector<8x384xf32> to vector<8x32xf32>
    %116 = vector.shape_cast %115 : vector<8x32xf32> to vector<1x8x32xf32>
    %117 = arith.truncf %116 : vector<1x8x32xf32> to vector<1x8x32xbf16>
    %118 = vector.extract_strided_slice %27 {offsets = [0, 352], sizes = [8, 32], strides = [1, 1]} : vector<8x384xf32> to vector<8x32xf32>
    %119 = vector.shape_cast %118 : vector<8x32xf32> to vector<1x8x32xf32>
    %120 = arith.truncf %119 : vector<1x8x32xf32> to vector<1x8x32xbf16>
    "tpu.trace_start"() <{level = 10 : i32, message = "btd,bsd->bts"}> : () -> ()
    %cst_34 = arith.constant dense<0.000000e+00> : vector<1x8x8xf32>
    %121 = tpu.matmul %114, %117, %cst_34 {dimension_numbers = #tpu.dot_dimension_numbers<[2], [2], [1], [1], [0, 0, 0, 1, 1, 1], [0], [0]>} : vector<1x8x32xbf16>, vector<1x8x32xbf16>, vector<1x8x8xf32> -> vector<1x8x8xf32>
    "tpu.trace_stop"() : () -> ()
    %cst_35 = arith.constant 0.176776692 : f32
    %122 = vector.broadcast %cst_35 : f32 to vector<1x8x8xf32>
    %123 = arith.mulf %121, %122 : vector<1x8x8xf32>
    %cst_36 = arith.constant 0xFF800000 : f32
    %124 = vector.broadcast %cst_36 : f32 to vector<1x8x8xf32>
    %125 = arith.select %30, %123, %124 : vector<1x8x8xi1>, vector<1x8x8xf32>
    %cst_37 = arith.constant dense<0xFF800000> : vector<1x8xf32>
    %126 = vector.multi_reduction <maximumf>, %125, %cst_37 [2] : vector<1x8x8xf32> to vector<1x8xf32>
    %127 = vector.shape_cast %126 : vector<1x8xf32> to vector<1x8x1xf32>
    %128 = vector.broadcast %127 : vector<1x8x1xf32> to vector<1x8x8xf32>
    %129 = arith.subf %125, %128 : vector<1x8x8xf32>
    %130 = math.exp %129 : vector<1x8x8xf32>
    %cst_38 = arith.constant dense<0.000000e+00> : vector<1x8xf32>
    %131 = vector.multi_reduction <add>, %130, %cst_38 [2] : vector<1x8x8xf32> to vector<1x8xf32>
    %132 = vector.shape_cast %131 : vector<1x8xf32> to vector<1x8x1xf32>
    %133 = vector.broadcast %132 : vector<1x8x1xf32> to vector<1x8x8xf32>
    %134 = arith.divf %130, %133 : vector<1x8x8xf32>
    %cst_39 = arith.constant dense<0.000000e+00> : vector<8x8xf32>
    %135 = vector.multi_reduction <add>, %134, %cst_39 [0] : vector<1x8x8xf32> to vector<8x8xf32>
    %136 = arith.truncf %134 : vector<1x8x8xf32> to vector<1x8x8xbf16>
    "tpu.trace_start"() <{level = 10 : i32, message = "bts,bsd->btd"}> : () -> ()
    %cst_40 = arith.constant dense<0.000000e+00> : vector<1x8x32xf32>
    %137 = tpu.matmul %136, %120, %cst_40 {dimension_numbers = #tpu.dot_dimension_numbers<[2], [1], [1], [2], [0, 0, 0, 1, 1, 2], [0], [0]>} : vector<1x8x8xbf16>, vector<1x8x32xbf16>, vector<1x8x32xf32> -> vector<1x8x32xf32>
    "tpu.trace_stop"() : () -> ()
    %138 = vector.shape_cast %137 : vector<1x8x32xf32> to vector<8x32xf32>
    %139 = vector.shape_cast %54 : vector<8x8xf32> to vector<1x8x8xf32>
    %140 = vector.shape_cast %81 : vector<8x8xf32> to vector<1x8x8xf32>
    %141 = vector.shape_cast %108 : vector<8x8xf32> to vector<1x8x8xf32>
    %142 = vector.shape_cast %135 : vector<8x8xf32> to vector<1x8x8xf32>
    %143 = tpu.concatenate %139, %140, %141, %142 in 0 : vector<1x8x8xf32>, vector<1x8x8xf32>, vector<1x8x8xf32>, vector<1x8x8xf32> -> vector<4x8x8xf32>
    %144 = vector.shape_cast %143 : vector<4x8x8xf32> to vector<1x1x4x8x8xf32>
    %c0_41 = arith.constant 0 : index
    %c0_42 = arith.constant 0 : index
    %c0_43 = arith.constant 0 : index
    %c0_44 = arith.constant 0 : index
    %c0_45 = arith.constant 0 : index
    %145 = vector.load %arg10[%c0_41, %c0_42, %c0_43, %c0_44, %c0_45] : memref<1x1x4x8x8xf32, #tpu.memory_space<vmem>>, vector<1x1x4x8x8xf32>
    tpu.vector_store %arg10[%c0_41, %c0_42, %c0_43, %c0_44, %c0_45], %144 {strides = array<i32>} : memref<1x1x4x8x8xf32, #tpu.memory_space<vmem>>, vector<1x1x4x8x8xf32>,
    %146 = tpu.concatenate %57, %84, %111, %138 in 1 : vector<8x32xf32>, vector<8x32xf32>, vector<8x32xf32>, vector<8x32xf32> -> vector<8x128xf32>
    %147 = arith.truncf %146 : vector<8x128xf32> to vector<8x128xbf16>
    %c0_46 = arith.constant 0 : index
    %c0_47 = arith.constant 0 : index
    %c0_48 = arith.constant 0 : index
    %148 = vector.load %arg5[%c0_46, %c0_47, %c0_48] : memref<1x128x128xbf16, #tpu.memory_space<vmem>>, vector<1x128x128xbf16>
    %149 = vector.shape_cast %148 : vector<1x128x128xbf16> to vector<128x128xbf16>
    %cst_49 = arith.constant dense<0.000000e+00> : vector<8x128xf32>
    %150 = tpu.matmul %147, %149, %cst_49 {dimension_numbers = #tpu.dot_dimension_numbers<[1], [0], [0], [1], [0, 0, 1, 1], [], []>} : vector<8x128xbf16>, vector<128x128xbf16>, vector<8x128xf32> -> vector<8x128xf32>
    %151 = arith.addf %3, %150 : vector<8x128xf32>
    %c0_50 = arith.constant 0 : index
    %c0_51 = arith.constant 0 : index
    %c0_52 = arith.constant 0 : index
    %152 = vector.load %arg6[%c0_50, %c0_51, %c0_52] : memref<1x1x128xf32, #tpu.memory_space<vmem>>, vector<1x1x128xf32>
    %153 = vector.shape_cast %152 : vector<1x1x128xf32> to vector<1x128xf32>
    %cst_53 = arith.constant dense<0.000000e+00> : vector<8xf32>
    %154 = vector.multi_reduction <add>, %151, %cst_53 [1] : vector<8x128xf32> to vector<8xf32>
    %155 = vector.shape_cast %154 : vector<8xf32> to vector<8x1xf32>
    %cst_54 = arith.constant 1.280000e+02 : f32
    %156 = vector.broadcast %cst_54 : f32 to vector<8x1xf32>
    %157 = arith.divf %155, %156 : vector<8x1xf32>
    %158 = vector.broadcast %157 : vector<8x1xf32> to vector<8x128xf32>
    %159 = arith.subf %151, %158 : vector<8x128xf32>
    %160 = arith.mulf %159, %159 : vector<8x128xf32>
    %cst_55 = arith.constant dense<0.000000e+00> : vector<8xf32>
    %161 = vector.multi_reduction <add>, %160, %cst_55 [1] : vector<8x128xf32> to vector<8xf32>
    %162 = vector.shape_cast %161 : vector<8xf32> to vector<8x1xf32>
    %cst_56 = arith.constant 1.280000e+02 : f32
    %163 = vector.broadcast %cst_56 : f32 to vector<8x1xf32>
    %164 = arith.divf %162, %163 : vector<8x1xf32>
    %cst_57 = arith.constant 9.99999974E-6 : f32
    %165 = vector.broadcast %cst_57 : f32 to vector<8x1xf32>
    %166 = arith.addf %164, %165 : vector<8x1xf32>
    %167 = math.rsqrt %166 : vector<8x1xf32>
    %168 = vector.broadcast %167 : vector<8x1xf32> to vector<8x128xf32>
    %169 = arith.mulf %159, %168 : vector<8x128xf32>
    %170 = vector.broadcast %153 : vector<1x128xf32> to vector<8x128xf32>
    %171 = arith.mulf %169, %170 : vector<8x128xf32>
    %172 = arith.truncf %171 : vector<8x128xf32> to vector<8x128xbf16>
    %c0_58 = arith.constant 0 : index
    %c0_59 = arith.constant 0 : index
    %c0_60 = arith.constant 0 : index
    %173 = vector.load %arg7[%c0_58, %c0_59, %c0_60] : memref<1x128x512xbf16, #tpu.memory_space<vmem>>, vector<1x128x512xbf16>
    %174 = vector.shape_cast %173 : vector<1x128x512xbf16> to vector<128x512xbf16>
    %cst_61 = arith.constant dense<0.000000e+00> : vector<8x512xf32>
    %175 = tpu.matmul %172, %174, %cst_61 {dimension_numbers = #tpu.dot_dimension_numbers<[1], [0], [0], [1], [0, 0, 1, 1], [], []>} : vector<8x128xbf16>, vector<128x512xbf16>, vector<8x512xf32> -> vector<8x512xf32>
    %cst_62 = arith.constant 5.000000e-01 : f32
    %176 = vector.broadcast %cst_62 : f32 to vector<8x512xf32>
    %177 = arith.mulf %176, %175 : vector<8x512xf32>
    %cst_63 = arith.constant 0.707106769 : f32
    %178 = vector.broadcast %cst_63 : f32 to vector<8x512xf32>
    %179 = arith.mulf %175, %178 : vector<8x512xf32>
    %180 = math.erf %179 : vector<8x512xf32>
    %cst_64 = arith.constant 1.000000e+00 : f32
    %181 = vector.broadcast %cst_64 : f32 to vector<8x512xf32>
    %182 = arith.addf %181, %180 : vector<8x512xf32>
    %183 = arith.mulf %177, %182 : vector<8x512xf32>
    %184 = arith.truncf %183 : vector<8x512xf32> to vector<8x512xbf16>
    %c0_65 = arith.constant 0 : index
    %c0_66 = arith.constant 0 : index
    %c0_67 = arith.constant 0 : index
    %185 = vector.load %arg8[%c0_65, %c0_66, %c0_67] : memref<1x512x128xbf16, #tpu.memory_space<vmem>>, vector<1x512x128xbf16>
    %186 = vector.shape_cast %185 : vector<1x512x128xbf16> to vector<512x128xbf16>
    %cst_68 = arith.constant dense<0.000000e+00> : vector<8x128xf32>
    %187 = tpu.matmul %184, %186, %cst_68 {dimension_numbers = #tpu.dot_dimension_numbers<[1], [0], [0], [1], [0, 0, 1, 1], [], []>} : vector<8x512xbf16>, vector<512x128xbf16>, vector<8x128xf32> -> vector<8x128xf32>
    %188 = arith.addf %151, %187 : vector<8x128xf32>
    %c0_69 = arith.constant 0 : index
    %c0_70 = arith.constant 0 : index
    %189 = vector.load %arg9[%c0_69, %c0_70] : memref<8x128xf32, #tpu.memory_space<vmem>>, vector<8x128xf32>
    tpu.vector_store %arg9[%c0_69, %c0_70], %188 {strides = array<i32>} : memref<8x128xf32, #tpu.memory_space<vmem>>, vector<8x128xf32>,
    return
  }
  func.func @transform_0(%arg0: i32, %arg1: i32) -> (i32, i32) {
    %c0_i32 = arith.constant 0 : i32
    %c0_i32_0 = arith.constant 0 : i32
    return %arg0, %c0_i32 : i32, i32
  }
  func.func @transform_1(%arg0: i32, %arg1: i32) -> (i32, i32, i32) {
    %c0_i32 = arith.constant 0 : i32
    %c0_i32_0 = arith.constant 0 : i32
    %c0_i32_1 = arith.constant 0 : i32
    return %arg1, %c0_i32, %c0_i32_0 : i32, i32, i32
  }
  func.func @transform_2(%arg0: i32, %arg1: i32) -> (i32, i32, i32) {
    %c0_i32 = arith.constant 0 : i32
    %c0_i32_0 = arith.constant 0 : i32
    %c0_i32_1 = arith.constant 0 : i32
    return %arg1, %c0_i32, %c0_i32_0 : i32, i32, i32
  }
  func.func @transform_3(%arg0: i32, %arg1: i32) -> (i32, i32, i32) {
    %c0_i32 = arith.constant 0 : i32
    %c0_i32_0 = arith.constant 0 : i32
    %c0_i32_1 = arith.constant 0 : i32
    return %arg1, %c0_i32, %c0_i32_0 : i32, i32, i32
  }
  func.func @transform_4(%arg0: i32, %arg1: i32) -> (i32, i32, i32) {
    %c0_i32 = arith.constant 0 : i32
    %c0_i32_0 = arith.constant 0 : i32
    %c0_i32_1 = arith.constant 0 : i32
    return %arg1, %c0_i32, %c0_i32_0 : i32, i32, i32
  }
  func.func @transform_5(%arg0: i32, %arg1: i32) -> (i32, i32, i32) {
    %c0_i32 = arith.constant 0 : i32
    %c0_i32_0 = arith.constant 0 : i32
    %c0_i32_1 = arith.constant 0 : i32
    return %arg1, %c0_i32, %c0_i32_0 : i32, i32, i32
  }
  func.func @transform_6(%arg0: i32, %arg1: i32) -> (i32, i32, i32) {
    %c0_i32 = arith.constant 0 : i32
    %c0_i32_0 = arith.constant 0 : i32
    %c0_i32_1 = arith.constant 0 : i32
    return %arg1, %c0_i32, %c0_i32_0 : i32, i32, i32
  }
  func.func @transform_7(%arg0: i32, %arg1: i32) -> (i32, i32) {
    %c0_i32 = arith.constant 0 : i32
    %c0_i32_0 = arith.constant 0 : i32
    return %arg0, %c0_i32 : i32, i32
  }
  func.func @transform_8(%arg0: i32, %arg1: i32) -> (i32, i32, i32, i32, i32) {
    %c0_i32 = arith.constant 0 : i32
    %c0_i32_0 = arith.constant 0 : i32
    %c0_i32_1 = arith.constant 0 : i32
    %c0_i32_2 = arith.constant 0 : i32
    return %arg1, %arg0, %c0_i32, %c0_i32_0, %c0_i32_1 : i32, i32, i32, i32, i32
  }
}

</mosaic_0001>

<bundles_post_ra>
// kernel: _lambda_.3
= control target key start
LH: loop header
LB: loop body
LE: loop exit
PB: predicated region body
PF: predicated region fallthrough
CT: control target
= control target key end

     0   :  { %8 = vsyncpa [#allocation3], 0  ;;  %s460_s0 = inlined_call_operand.hbm [shape: f32[16,128], index: 0, kind: input, shape index: {}]   ;;  %s461_s1 = inlined_call_operand.hbm [shape: f32[1,128], index: 1, kind: input, shape index: {}]   ;;  %s462_s2 = inlined_call_operand.hbm [shape: bf16[128,128], index: 2, kind: input, shape index: {}]   ;;  %s463_s3 = inlined_call_operand.hbm [shape: f32[16,128], index: 3, kind: output, shape index: {}]  }
   0x1   :  { %9 = vsyncpa [#allocation6], 0 }
   0x2   :  { %10 = vsyncpa [#allocation4], 0  ;;  %s369_s12 = smov [#allocation5]   ;;  %s370_s14 = smov [#allocation2]  }
   0x3   :  { %s29_s13 = sshll.u32 %s369_s12, 4  ;;  %s16_s15 = sshll.u32 %s370_s14, 4  ;;  %s30_s13 = int_to_ptr.vmem [resolvable:$true] %s29_s13  ;;  %s399_s15 = int_to_ptr.vmem [resolvable:$true] %s16_s15 }
   0x4   :  { %s275_s18 = scalar_lea.hbm %s461_s1, 16 }
   0x5   :  { %p276_p0 = scmp.ne.s32.totalorder %s461_s1, %s275_s18  ;;  %p279_p1 = scmp.lt.u32.totalorder %s275_s18, %s461_s1 }
   0x7   :  { %p281_p2 = pnand %p279_p1, %p276_p0 }
   0x9   :  { %284 = shalt.err (!%p281_p2)
}
   0xa   :  { %s285_s23 = scalar_lea.vmem %s30_s13, 16  ;;  %s289_s24 = scalar_lea.vmem %s30_s13, 32 }
   0xb   :  { %p286_p3 = scmp.ne.s32.totalorder %s30_s13, %s285_s23  ;;  %p290_p4 = scmp.lt.s32.totalorder %s30_s13, %s30_s13 }
   0xc   :  { %p291_p5 = scmp.lt.s32.totalorder %s289_s24, %s285_s23 }
   0xe   :  { %p292_p6 = por %p291_p5, %p290_p4 }
  0x10   :  { %p293_p7 = pnand %p292_p6, %p286_p3 }
  0x12   :  { %296 = shalt.err (!%p293_p7)
}
  0x13   :  { %32 = dma.hbm_to_vmem [thread:$0]  %s461_s1, 16, %s30_s13, [#allocation6]  }
  0x14   :  { %s297_s29 = scalar_lea.hbm %s460_s0, 256 }
  0x15   :  { %p298_p8 = scmp.ne.s32.totalorder %s460_s0, %s297_s29  ;;  %p301_p9 = scmp.lt.u32.totalorder %s297_s29, %s460_s0 }
  0x17   :  { %p303_p10 = pnand %p301_p9, %p298_p8 }
  0x19   :  { %306 = shalt.err (!%p303_p10)
}
  0x1a   :  { %s307_s7 = scalar_lea.vmem %s399_s15, 256  ;;  %p312_p12 = scmp.lt.s32.totalorder %s399_s15, %s399_s15 }
  0x1b   :  { %p308_p11 = scmp.ne.s32.totalorder %s399_s15, %s307_s7  ;;  %p313_p13 = scmp.lt.s32.totalorder %s307_s7, %s307_s7 }
  0x1d   :  { %p314_p0 = por %p313_p13, %p312_p12 }
  0x1f   :  { %p315_p1 = pnand %p314_p0, %p308_p11 }
  0x21   :  { %318 = shalt.err (!%p315_p1)
}
  0x22   :  { %s371_s1 = smov 128   ;;  %s372_s8 = smov 8  }
  0x23   :  { %22 = dma.hbm_to_vmem [thread:$0]  %s460_s0, 256, %s399_s15, [#allocation3], %s371_s1, %s371_s1, %s372_s8  }
  0x24   :  { %s373_s11 = smov [#allocation7]   ;;  %s319_s16 = scalar_lea.hbm %s462_s2, 1024 }
  0x25   :  { %s38_s12 = sshll.u32 %s373_s11, 4  ;;  %p320_p2 = scmp.ne.s32.totalorder %s462_s2, %s319_s16  ;;  %s39_s12 = int_to_ptr.vmem [resolvable:$true] %s38_s12 }
  0x26   :  { %p323_p3 = scmp.lt.u32.totalorder %s319_s16, %s462_s2 }
  0x28   :  { %p325_p4 = pnand %p323_p3, %p320_p2 }
  0x2a   :  { %328 = shalt.err (!%p325_p4)
}
  0x2b   :  { %s329_s21 = scalar_lea.vmem %s39_s12, 1024  ;;  %p334_p6 = scmp.lt.s32.totalorder %s39_s12, %s39_s12 }
  0x2c   :  { %p330_p5 = scmp.ne.s32.totalorder %s39_s12, %s329_s21  ;;  %p335_p7 = scmp.lt.s32.totalorder %s329_s21, %s329_s21 }
  0x2e   :  { %p336_p8 = por %p335_p7, %p334_p6 }
  0x30   :  { %p337_p9 = pnand %p336_p8, %p330_p5 }
  0x32   :  { %340 = shalt.err (!%p337_p9)
}
  0x33   :  { %s374_s0 = smov 64   ;;  %s375_s15 = smov 4  }
  0x34   :  { %44 = dma.hbm_to_vmem [thread:$0]  %s462_s2, 1024, %s39_s12, [#allocation6], %s374_s0, %s374_s0, %s375_s15  }
  0x35   :  { %363 = dma.done.wait [#allocation3], 256  }
  0x36   :  { %364 = vsyncadd [#allocation3], 4294967040 }
  0x37   :  { %365 = dma.done.wait [#allocation6], 1040  }
  0x38   :  { %366 = vsyncadd [#allocation6], 4294966256  ;;  %v55_v0 = vld [vmem:[#allocation2] sm:$0xff]  ;;  %v56_v1 = vld [vmem:[#allocation2 + $0x8] sm:$0xff]  ;;  %v376_v3 = vmov 0.0   ;;  %vm377_vm0 = vmmov 0  }
  0x39   :  { %58 = vadd.xlane.f32.xlu0 %v55_v0  ;;  %v263_v2 = vld [vmem:[#allocation7] sm:$0xff]   ;;  %233 = vmatprep.subr.bf16.mxu0 %v376_v3  ;;  %v264_v4 = vld [vmem:[#allocation7 + $0x8] sm:$0xff]   ;;  %v265_v13 = vld [vmem:[#allocation7 + $0x10] sm:$0xff]   ;;  %s378_s2 = smov [#allocation8]  }
  0x3a   :  { %234 = vmatpush3.bf16.msra.mxu0 %v263_v2  ;;  %v266_v14 = vld [vmem:[#allocation7 + $0x18] sm:$0xff]   ;;  %v267_v15 = vld [vmem:[#allocation7 + $0x20] sm:$0xff]   ;;  %249 = vmatprep.mubr.msk.bf16.mxu0 %vm377_vm0, %v376_v3  ;;  %v268_v16 = vld [vmem:[#allocation7 + $0x28] sm:$0xff]   ;;  %s202_s24 = sshll.u32 %s378_s2, 4  ;;  %s203_s24 = int_to_ptr.vmem [resolvable:$true] %s202_s24 }
  0x3b   :  { %235 = vmatprep.subr.bf16.mxu0 %v376_v3  ;;  %v269_v17 = vld [vmem:[#allocation7 + $0x30] sm:$0xff]   ;;  %v270_v18 = vld [vmem:[#allocation7 + $0x38] sm:$0xff]   ;;  %s341_s25 = scalar_lea.vmem %s203_s24, 256  ;;  %p346_p11 = scmp.lt.s32.totalorder %s203_s24, %s203_s24 }
  0x3c   :  { %v215_v28 = vld [vmem:[#allocation5] ss:$0 sm:$0xff]  ;;  %p342_p10 = scmp.ne.s32.totalorder %s203_s24, %s341_s25  ;;  %p347_p12 = scmp.lt.s32.totalorder %s341_s25, %s341_s25 }
  0x3d   :  { %60 = vadd.xlane.f32.xlu0 %v56_v1 }
  0x3e   :  { %236 = vmatpush3.bf16.msra.mxu0 %v264_v4  ;;  %p348_p13 = por %p347_p12, %p346_p11 }
  0x3f   :  { %237 = vmatprep.subr.bf16.mxu0 %v376_v3 }
  0x40   :  { %p349_p0 = pnand %p348_p13, %p342_p10 }
  0x42   :  { %238 = vmatpush3.bf16.msra.mxu0 %v265_v13 }
  0x43   :  { %239 = vmatprep.subr.bf16.mxu0 %v376_v3 }
  0x46   :  { %240 = vmatpush3.bf16.msra.mxu0 %v266_v14 }
  0x47   :  { %241 = vmatprep.subr.bf16.mxu0 %v376_v3 }
  0x4a   :  { %242 = vmatpush3.bf16.msra.mxu0 %v267_v15 }
  0x4b   :  { %243 = vmatprep.subr.bf16.mxu0 %v376_v3 }
  0x4e   :  { %244 = vmatpush3.bf16.msra.mxu0 %v268_v16 }
  0x4f   :  { %245 = vmatprep.subr.bf16.mxu0 %v376_v3 }
  0x52   :  { %246 = vmatpush3.bf16.msra.mxu0 %v269_v17 }
  0x53   :  { %247 = vmatprep.subr.bf16.mxu0 %v376_v3 }
  0x56   :  { %248 = vmatpush3.bf16.msra.mxu0 %v270_v18 }
  0xc6   :  { %v59_v5 = vpop.xlane.xlu0 %58 }
  0xc7   :  { %v63_v6 = vmul.f32 0.0078125, %v59_v5 }
  0xc9   :  { %v65_v7 = vsub.f32 %v55_v0, %v63_v6 }
  0xca   :  { %v61_v8 = vpop.xlane.xlu0 %60 }
  0xcb   :  { %v64_v9 = vmul.f32 0.0078125, %v61_v8  ;;  %v67_v10 = vmul.f32 %v65_v7, %v65_v7 }
  0xcd   :  { %v66_v11 = vsub.f32 %v56_v1, %v64_v9  ;;  %69 = vadd.xlane.f32.xlu1 %v67_v10 }
  0xcf   :  { %v68_v12 = vmul.f32 %v66_v11, %v66_v11 }
  0xd1   :  { %71 = vadd.xlane.f32.xlu1 %v68_v12 }
 0x15a   :  { %v70_v19 = vpop.xlane.xlu1 %69 }
 0x15b   :  { %v73_v20 = vmul.f32 0.0078125, %v70_v19 }
 0x15d   :  { %v75_v21 = vadd.f32 1e-05, %v73_v20 }
 0x15e   :  { %v72_v22 = vpop.xlane.xlu1 %71 }
 0x15f   :  { %271 = vrsqrt.f32 %v75_v21  ;;  %v74_v23 = vmul.f32 0.0078125, %v72_v22 }
 0x161   :  { %v76_v24 = vadd.f32 1e-05, %v74_v23 }
 0x163   :  { %273 = vrsqrt.f32 %v76_v24 }
 0x169   :  { %v272_v25 = vpop.eup %271 }
 0x16a   :  { %v79_v26 = vmul.f32 %v272_v25, %v65_v7 }
 0x16c   :  { %v87_v30 = vmul.f32 %v215_v28, %v79_v26 }
 0x16d   :  { %v274_v27 = vpop.eup %273 }
 0x16e   :  { %v80_v29 = vmul.f32 %v274_v27, %v66_v11 }
 0x170   :  { %v88_v31 = vmul.f32 %v215_v28, %v80_v29 }
 0x172   :  { %v89_v32 = vpack.c.bf16 %v88_v31, %v87_v30 }
 0x174   :  { %250 = vmatmul.mubr.bf16.vlgmr.msra.gmra.mrb[0].mxu0 %v89_v32 }
 0x247   :  { %v188_v33 = vpop.f32.mrb[0].mxu0 }
 0x248   :  { %195 = vst [vmem:[#allocation8] sm:$0xff] %v188_v33  ;;  %v251_v34 = vpop.f32.mrb[1].mxu0 }
 0x249   :  { %v191_v35 = vpop.f32.mrb[2].mxu0 }
 0x24a   :  { %196 = vst [vmem:[#allocation8 + $0x8] sm:$0xff] %v191_v35  ;;  %v252_v36 = vpop.f32.mrb[3].mxu0 }
 0x24b   :  { %352 = shalt.err (!%p349_p0)
}
 0x24c   :  { %s353_s28 = scalar_lea.hbm %s463_s3, 256 }
 0x24d   :  { %p354_p1 = scmp.ne.s32.totalorder %s463_s3, %s353_s28  ;;  %p357_p2 = scmp.lt.u32.totalorder %s353_s28, %s463_s3 }
 0x24f   :  { %p359_p3 = pnand %p357_p2, %p354_p1 }
 0x251   :  { %362 = shalt.err (!%p359_p3)
}
 0x252   :  { %208 = dma.vmem_to_hbm [thread:$0]  %s203_s24, 256, %s463_s3, [#allocation4], %s371_s1, %s371_s1, %s372_s8  }
 0x253   :  { %367 = dma.done.wait [#allocation4], 256  }
 0x254   :  { %368 = vsyncadd [#allocation4], 4294967040 }
 0x255   :  { %212 = vsyncpa [#allocation3], 1 }
 0x256   :  { %213 = vsyncpa [#allocation6], 1 }
 0x257   :  { %214 = vsyncpa [#allocation4], 1 }

// kernel: _lambda_.2
= control target key start
LH: loop header
LB: loop body
LE: loop exit
PB: predicated region body
PF: predicated region fallthrough
CT: control target
= control target key end

     0   :  { %s4304_s0 = inlined_call_operand.hbm [shape: f32[16,128], index: 0, kind: input, shape index: {}, may-alias: {0,7}]   ;;  %s4305_s1 = inlined_call_operand.hbm [shape: f32[2,1,128], index: 1, kind: input, shape index: {}]   ;;  %s4306_s2 = inlined_call_operand.hbm [shape: bf16[2,128,384], index: 2, kind: input, shape index: {}]   ;;  %s4307_s3 = inlined_call_operand.hbm [shape: bf16[2,128,128], index: 3, kind: input, shape index: {}]   ;;  %s4308_s4 = inlined_call_operand.hbm [shape: f32[2,1,128], index: 4, kind: input, shape index: {}]   ;;  %s4309_s5 = inlined_call_operand.hbm [shape: bf16[2,128,512], index: 5, kind: input, shape index: {}]   ;;  %s4310_s6 = inlined_call_operand.hbm [shape: bf16[2,512,128], index: 6, kind: input, shape index: {}]   ;;  %s4311_s7 = inlined_call_operand.hbm [shape: f32[16,128], index: 7, kind: output, shape index: {0}, may-alias: {0,7}]   ;;  %s4312_s8 = inlined_call_operand.hbm [shape: f32[2,2,4,8,8], index: 8, kind: output, shape index: {1}]  }
   0x1   :  { %4352 = sst [smem:[#allocation43_spill]] %s4304_s0 }
   0x2   :  { %4353 = sst [smem:[#allocation44_spill]] %s4305_s1 }
   0x3   :  { %4354 = sst [smem:[#allocation45_spill]] %s4306_s2 }
   0x4   :  { %4355 = sst [smem:[#allocation46_spill]] %s4307_s3 }
   0x5   :  { %4356 = sst [smem:[#allocation47_spill]] %s4309_s5 }
   0x6   :  { %4357 = sst [smem:[#allocation48_spill]] %s4311_s7 }
   0x7   :  { %4358 = sst [smem:[#allocation49_spill]] %s4312_s8 }
   0x8   :  { %14 = vsyncpa [#allocation3], 0 }
   0x9   :  { %16 = vsyncpa [#allocation3 + $0x1], 0 }
   0xa   :  { %17 = vsyncpa [#allocation6], 0 }
   0xb   :  { %19 = vsyncpa [#allocation6 + $0x1], 0 }
   0xc   :  { %20 = vsyncpa [#allocation9], 0 }
   0xd   :  { %22 = vsyncpa [#allocation9 + $0x1], 0 }
   0xe   :  { %23 = vsyncpa [#allocation12], 0 }
   0xf   :  { %25 = vsyncpa [#allocation12 + $0x1], 0 }
  0x10   :  { %26 = vsyncpa [#allocation4], 0 }
  0x11   :  { %28 = vsyncpa [#allocation4 + $0x1], 0 }
  0x12   :  { %29 = vsyncpa [#allocation16], 0 }
  0x13   :  { %31 = vsyncpa [#allocation16 + $0x1], 0  ;;  %s3459_s27 = smov 0   ;;  %s3461_s28 = smov 0  }
  0x14   :  { %s3463_s29 = smov 0   ;;  %s3465_s30 = smov 0  }
  0x15   :  { %s3467_s9 = smov 0   ;;  %s3469_s10 = smov 0  }
  0x16   :  { %s3471_s11 = smov 0   ;;  %s3473_s12 = smov 0  }
  0x17   :  { %s3475_s13 = smov 0   ;;  %s3477_s14 = smov 0  }
  0x18   :  { %s3479_s15 = smov 0   ;;  %s3481_s16 = smov 0  }
  0x19   :  { %s3483_s17 = smov 0   ;;  %s3485_s18 = smov 0  }
  0x1a LB: > { %4359 = sst [smem:[#allocation23_spill]] %s3337_s27  ;;  %p4319_p0 = scmp.eq.s32.totalorder %s3389_s18, 0  ;;  %s3389_s18 = sphi %s3485_s18, %s37_s18   ;;  %s3385_s17 = sphi %s3483_s17, %s4444_s17   ;;  %s3381_s16 = sphi %s3481_s16, %s4443_s16   ;;  %s3377_s15 = sphi %s3479_s15, %s4442_s15   ;;  %s3373_s14 = sphi %s3477_s14, %s4449_s14   ;;  %s3369_s13 = sphi %s3475_s13, %s4440_s13   ;;  %s3365_s12 = sphi %s3473_s12, %s4448_s12   ;;  %s3361_s11 = sphi %s3471_s11, %s4447_s11   ;;  %s3357_s10 = sphi %s3469_s10, %s4438_s10   ;;  %s3353_s9 = sphi %s3467_s9, %s4437_s9   ;;  %s3349_s30 = sphi %s3465_s30, %s4436_s30   ;;  %s3345_s29 = sphi %s3463_s29, %s4446_s29   ;;  %s3341_s28 = sphi %s3461_s28, %s4434_s28   ;;  %s3337_s27 = sphi %s3459_s27, %s4433_s27  }
  0x1b   : > { %4360 = sst [smem:[#allocation24_spill]] %s3341_s28  ;;  %p89_p1 = scmp.ne.s32.totalorder %s3357_s10, %s3353_s9 }
  0x1c   : > { %4361 = sst [smem:[#allocation25_spill]] %s3345_s29  ;;  %p4318_p2 = scmp.lt.s32.totalorder %s3389_s18, 4 }
  0x1d   : > { %4362 = sst [smem:[#allocation26_spill]] %s3353_s9  ;;  %p91_p3 = por %p89_p1, %p4319_p0 }
  0x1e   : > { %4363 = sst [smem:[#allocation27_spill]] %s3357_s10  ;;  %s3537_s20 = sand.u32 1, %s3389_s18  }
  0x1f   : > { %4364 = sst [smem:[#allocation28_spill]] %s3369_s13  ;;  %s3540_s21 = sand.u32 1, %s3357_s10  }
  0x20   : > { %4365 = sst [smem:[#allocation29_spill]] %s3373_s14  ;;  %s4316_s22 = sshll.u32 %s3381_s16, 4 }
  0x21   : > { %4366 = sst [smem:[#allocation30_spill]] %s3377_s15  ;;  %s4370_s1 = sld [smem:[#allocation44_spill]] }
  0x22   : > { %4367 = sst [smem:[#allocation31_spill]] %s3381_s16  ;;  %s324_s26 = scalar_lea.vmem [#allocation5], %s3540_s21 }
  0x23   : > { %4368 = sst [smem:[#allocation32_spill]] %s3385_s17  ;;  %s331_s19 = sshll.u32 %s324_s26, 4  ;;  %s3551_s19 = int_to_ptr.vmem [resolvable:$true] %s331_s19 }
  0x24   : > { %4369 = sst [smem:[#allocation33_spill]] %s3537_s20  ;;  %p3555_p4 = pnand %p4318_p2, %p91_p3 }
  0x26   : > { %s4371_s7 = scalar_select %p3555_p4, 1, 0 }
  0x27   : > { %s3548_s25 = scalar_lea.hbm %s4370_s1, %s4316_s22  ;;  %p3566_p7 = pneg %p3555_p4 }
  0x28   : > { %4372 = sst [smem:[#allocation34_spill]] %s4371_s7  ;;  %s2989_s15 = scalar_lea.hbm %s3548_s25, 16 }
  0x29   : > { %p2990_p6 = scmp.ne.s32.totalorder %s3548_s25, %s2989_s15  ;;  %s2994_s22 = scalar_lea.hbm %s4370_s1, 32 }
  0x2a   : > { %p2995_p10 = scmp.lt.u32.totalorder %s3548_s25, %s4370_s1  ;;  %p2996_p11 = scmp.lt.u32.totalorder %s2994_s22, %s2989_s15 }
  0x2b   : > { %p2992_p8 = pnand %p3566_p7, %p2990_p6  ;;  %p2998_p13 = scmp.lt.u32.totalorder %s2989_s15, %s3548_s25 }
  0x2c   : > { %p2997_p12 = por %p2996_p11, %p2995_p10 }
  0x2d   : > { %p2993_p9 = pneg %p2992_p8 }
  0x2e   : > { %p2999_p1 = por %p2998_p13, %p2997_p12 }
  0x30   : > { %p3000_p3 = pnand %p2999_p1, %p2993_p9 }
  0x32   : > { %3003 = shalt.err (!%p3000_p3)
}
  0x33   : > { %s3004_s8 = scalar_lea.vmem %s3551_s19, 16  ;;  %s3391_s24 = smov [#allocation5]  }
  0x34   : > { %p3005_p6 = scmp.ne.s32.totalorder %s3551_s19, %s3004_s8  ;;  %s3009_s26 = sshll.u32 %s3391_s24, 4  ;;  %s3010_s26 = int_to_ptr.vmem [resolvable:$false] %s3009_s26 }
  0x35   : > { %s3011_s2 = scalar_lea.vmem %s3010_s26, 32  ;;  %p3012_p5 = scmp.lt.s32.totalorder %s3551_s19, %s3010_s26 }
  0x36   : > { %p3007_p8 = pnand %p3005_p6, %p3566_p7  ;;  %p3013_p0 = scmp.lt.s32.totalorder %s3011_s2, %s3004_s8 }
  0x38   : > { %p3008_p2 = pneg %p3007_p8  ;;  %p3014_p10 = por %p3013_p0, %p3012_p5 }
  0x3a   : > { %p3015_p11 = pnand %p3014_p10, %p3008_p2 }
  0x3c   : > { %3018 = shalt.err (!%p3015_p11)
}
  0x3d   : > { %s4374_s14 = scalar_lea.sflag [#allocation6], %s3537_s20  ;;  %p2372_p9 = scmp.ge.s32.totalorder %s3389_s18, 1 }
  0x3e   : > { %2690 = dma.hbm_to_vmem [thread:$0]  (!%p3555_p4), %s3548_s25, 16, %s3551_s19, %s4374_s14  }
  0x3f   : > { %p437_p12 = scmp.lt.s32.totalorder %s3389_s18, 5  ;;  %s2362_s8 = sshll.u32 %s3540_s21, 6 }
  0x40   : > { %s2494_s15 = sshll.u32 %s3381_s16, 10  ;;  %s4377_s3 = sld [smem:[#allocation46_spill]] }
  0x41   : > { %p3595_p0 = pnand %p2372_p9, %p437_p12  ;;  %s363_s1 = scalar_lea.vmem [#allocation8], %s2362_s8 }
  0x42   : > { %s370_s0 = sshll.u32 %s363_s1, 4  ;;  %s2366_s19 = sshll.u32 %s3540_s21, 8  ;;  %s3604_s0 = int_to_ptr.vmem [resolvable:$true] %s370_s0 }
  0x43   : > { %s4375_s22 = scalar_select %p3595_p0, 1, 0 }
  0x44   : > { %s4326_s25 = scalar_lea.sflag [#allocation9], %s3537_s20 }
  0x45   : > { %4376 = sst [smem:[#allocation35_spill]] %s4375_s22 }
  0x46   : > { %s3602_s2 = scalar_lea.hbm %s4377_s3, %s2494_s15  ;;  %s3024_s15 = scalar_lea.hbm %s4377_s3, 2048 }
  0x47   : > { %s3019_s14 = scalar_lea.hbm %s3602_s2, 1024  ;;  %p3025_p1 = scmp.lt.u32.totalorder %s3602_s2, %s4377_s3 }
  0x48   : > { %p3020_p2 = scmp.ne.s32.totalorder %s3602_s2, %s3019_s14  ;;  %p3026_p3 = scmp.lt.u32.totalorder %s3024_s15, %s3019_s14 }
  0x49   : > { %p3028_p8 = scmp.lt.u32.totalorder %s3019_s14, %s3602_s2 }
  0x4a   : > { %p3022_p5 = pnand %p3020_p2, %p3566_p7  ;;  %p3027_p6 = por %p3026_p3, %p3025_p1 }
  0x4c   : > { %p3023_p13 = pneg %p3022_p5  ;;  %p3029_p10 = por %p3028_p8, %p3027_p6 }
  0x4e   : > { %p3030_p11 = pnand %p3029_p10, %p3023_p13 }
  0x50   : > { %3033 = shalt.err (!%p3030_p11)
}
  0x51   : > { %s3034_s1 = scalar_lea.vmem %s3604_s0, 1024  ;;  %s3392_s27 = smov [#allocation8]  }
  0x52   : > { %p3035_p9 = scmp.ne.s32.totalorder %s3604_s0, %s3034_s1  ;;  %s3039_s8 = sshll.u32 %s3392_s27, 4  ;;  %s3040_s8 = int_to_ptr.vmem [resolvable:$false] %s3039_s8 }
  0x53   : > { %s3041_s22 = scalar_lea.vmem %s3040_s8, 2048  ;;  %p3042_p5 = scmp.lt.s32.totalorder %s3604_s0, %s3040_s8 }
  0x54   : > { %p3037_p12 = pnand %p3035_p9, %p3566_p7  ;;  %p3043_p0 = scmp.lt.s32.totalorder %s3041_s22, %s3034_s1 }
  0x56   : > { %p3038_p2 = pneg %p3037_p12  ;;  %p3044_p1 = por %p3043_p0, %p3042_p5 }
  0x58   : > { %p3045_p3 = pnand %p3044_p1, %p3038_p2 }
  0x5a   : > { %3048 = shalt.err (!%p3045_p3)
}
  0x5b   : > { %s4324_s14 = smov 64   ;;  %s4325_s15 = smov 4  }
  0x5c   : > { %2696 = dma.hbm_to_vmem [thread:$0]  (!%p3555_p4), %s3602_s2, 1024, %s3604_s0, %s4326_s25, %s4324_s14, %s4324_s14, %s4325_s15  }
  0x5d   : > { %s2495_s24 = sshll.u32 %s3381_s16, 12  ;;  %s4378_s5 = sld [smem:[#allocation47_spill]] }
  0x5e   : > { %s401_s8 = scalar_lea.vmem [#allocation11], %s2366_s19  ;;  %s4331_s3 = scalar_lea.sflag [#allocation12], %s3537_s20 }
  0x5f   : > { %s408_s22 = sshll.u32 %s401_s8, 4  ;;  %s3644_s22 = int_to_ptr.vmem [resolvable:$true] %s408_s22 }
  0x63   : > { %s3640_s27 = scalar_lea.hbm %s4378_s5, %s2495_s24  ;;  %s3054_s26 = scalar_lea.hbm %s4378_s5, 8192 }
  0x64   : > { %s3049_s28 = scalar_lea.hbm %s3640_s27, 4096  ;;  %p3055_p8 = scmp.lt.u32.totalorder %s3640_s27, %s4378_s5 }
  0x65   : > { %p3050_p0 = scmp.ne.s32.totalorder %s3640_s27, %s3049_s28  ;;  %p3056_p10 = scmp.lt.u32.totalorder %s3054_s26, %s3049_s28 }
  0x66   : > { %p3058_p9 = scmp.lt.u32.totalorder %s3049_s28, %s3640_s27 }
  0x67   : > { %p3052_p13 = pnand %p3050_p0, %p3566_p7  ;;  %p3057_p11 = por %p3056_p10, %p3055_p8 }
  0x69   : > { %p3053_p6 = pneg %p3052_p13  ;;  %p3059_p12 = por %p3058_p9, %p3057_p11 }
  0x6b   : > { %p3060_p2 = pnand %p3059_p12, %p3053_p6 }
  0x6d   : > { %3063 = shalt.err (!%p3060_p2)
}
  0x6e   : > { %s3064_s8 = scalar_lea.vmem %s3644_s22, 4096  ;;  %s3395_s0 = smov [#allocation11]  }
  0x6f   : > { %p3065_p5 = scmp.ne.s32.totalorder %s3644_s22, %s3064_s8  ;;  %s3069_s2 = sshll.u32 %s3395_s0, 4  ;;  %s3070_s2 = int_to_ptr.vmem [resolvable:$false] %s3069_s2 }
  0x70   : > { %s3071_s14 = scalar_lea.vmem %s3070_s2, 8192  ;;  %p3072_p0 = scmp.lt.s32.totalorder %s3644_s22, %s3070_s2 }
  0x71   : > { %p3067_p1 = pnand %p3065_p5, %p3566_p7  ;;  %p3073_p13 = scmp.lt.s32.totalorder %s3071_s14, %s3064_s8 }
  0x73   : > { %p3068_p3 = pneg %p3067_p1  ;;  %p3074_p8 = por %p3073_p13, %p3072_p0 }
  0x75   : > { %p3075_p10 = pnand %p3074_p8, %p3068_p3 }
  0x77   : > { %3078 = shalt.err (!%p3075_p10)
}
  0x78   : > { %s3396_s28 = smov 256   ;;  %s3397_s26 = smov 16  }
  0x79   : > { %2702 = dma.hbm_to_vmem [thread:$0]  (!%p3555_p4), %s3640_s27, 4096, %s3644_s22, %s4331_s3, %s3396_s28, %s3396_s28, %s3397_s26  }
  0x7a   : > { %s4379_s1 = sshll.u32 %s3381_s16, 4  ;;  %s3682_s25 = scalar_lea.hbm %s4310_s6, %s2495_s24 }
  0x7b   : > { %s3675_s2 = scalar_lea.hbm %s4308_s4, %s4379_s1  ;;  %s3686_s5 = scalar_lea.vmem [#allocation13], %s2366_s19 }
  0x7c   : > { %s3690_s7 = sadd.s32 4294967295, %s3389_s18   ;;  %s2355_s27 = sadd.s32 4294967294, %s3389_s18  }
  0x7d   : > { %s46_s22 = sadd.s32 1, %s3381_s16  ;;  %s49_s15 = sadd.s32 1, %s3385_s17 }
  0x7e   : > { %p47_p6 = scmp.ge.s32.totalorder %s46_s22, 2  ;;  %s56_s24 = sadd.s32 1, %s3369_s13 }
  0x7f   : > { %p63_p11 = scmp.ne.s32.totalorder %s3369_s13, %s3365_s12  ;;  %p4381_p9 = scmp.eq.s32.totalorder %s3389_s18, 0 }
  0x80   : > { %s4451_s22 = smov (%p47_p6, %s46_s22), 0  ;;  %s4453_s15 = smov (!%p47_p6, %s49_s15), %s3385_s17 }
  0x81   : > { %4380 = sst [smem:[#allocation36_spill]] %s4451_s22  ;;  %p3706_p12 = por %p4381_p9, %p63_p11 }
  0x82   : > { %p69_p2 = scmp.ne.s32.totalorder %s3365_s12, %s3361_s11  ;;  %p51_p5 = scmp.ge.s32.totalorder %s4453_s15, 2 }
  0x83   : > { %p70_p1 = scmp.eq.s32.totalorder %s3690_s7, 0  ;;  %s79_s28 = ssub.s32 %s3381_s16, %s4451_s22 }
  0x84   : > { %s4383_s26 = sld [smem:[#allocation24_spill]]  ;;  %p249_p3 = scmp.eq.s32.totalorder %s3690_s7, 3 }
  0x85   : > { %s4455_s15 = smov (%p51_p5, %s4453_s15), 0  ;;  %p3721_p0 = por %p70_p1, %p69_p2 }
  0x86   : > { %4384 = sst [smem:[#allocation37_spill]] %s4455_s15  ;;  %s4387_s8 = sld [smem:[#allocation23_spill]] }
  0x87   : > { %s4385_s1 = scalar_select %p3721_p0, 1, 0 }
  0x88   : > { %p80_p13 = scmp.eq.s32.totalorder %s79_s28, 0  ;;  %s53_s0 = ssub.s32 %s3385_s17, %s4455_s15 }
  0x89   : > { %4386 = sst [smem:[#allocation38_spill]] %s4385_s1  ;;  %p4388_p8 = scmp.ne.s32.totalorder %s3353_s9, %s3349_s30 }
  0x8a   : > { %p54_p6 = scmp.eq.s32.totalorder %s53_s0, 0  ;;  %p3739_p9 = por %p249_p3, %p63_p11 }
  0x8b   : > { %p3730_p10 = por %p4388_p8, %p70_p1  ;;  %s4392_s20 = sadd.s32 1, %s3357_s10 }
  0x8c   : > { %s4391_s3 = scalar_select %p3739_p9, 1, 0 }
  0x8d   : > { %s4389_s14 = scalar_select %p3730_p10, 1, 0 }
  0x8e   : > { %s3746_s22 = scalar_select %p80_p13, %s3357_s10, %s4392_s20  }
  0x8f   : > { %4390 = sst [smem:[#allocation39_spill]] %s4389_s14  ;;  %p255_p5 = scmp.eq.s32.totalorder %s2355_s27, 3 }
  0x90   : > { %4393 = sst [smem:[#allocation40_spill]] %s3746_s22  ;;  %s263_s30 = sor.u32 %s79_s28, %s53_s0 }
  0x91   : > { %s3749_s1 = scalar_select %p54_p6, %s3369_s13, %s56_s24  }
  0x92   : > { %p264_p1 = scmp.eq.s32.totalorder %s263_s30, 0  ;;  %s266_s15 = sadd.s32 1, %s3345_s29 }
  0x93   : > { %4394 = sst [smem:[#allocation41_spill]] %s3749_s1  ;;  %p3755_p8 = por %p255_p5, %p69_p2 }
  0x94   : > { %p276_p11 = scmp.ne.s32.totalorder %s3345_s29, %s4383_s26  ;;  %p282_p6 = scmp.ne.s32.totalorder %s4383_s26, %s4387_s8 }
  0x95   : > { %s4395_s14 = scalar_select %p3755_p8, 1, 0 }
  0x96   : > { %s3762_s9 = scalar_select %p264_p1, %s3345_s29, %s266_s15  }
  0x97   : > { %p3766_p13 = por %p276_p11, %p249_p3  ;;  %s303_s24 = sand.u32 1, %s3369_s13  }
  0x98   : > { %4396 = sst [smem:[#allocation42_spill]] %s3762_s9  ;;  %s2359_s27 = sshll.u32 %s3385_s17, 7 }
  0x99   : > { %s4397_s20 = scalar_select %p3766_p13, 1, 0 }
  0x9a   : > { %p3774_p9 = por %p282_p6, %p255_p5  ;;  %s2358_s0 = sshll.u32 %s303_s24, 3 }
  0x9b   : > { %s4399_s22 = sld [smem:[#allocation43_spill]]  ;;  %p4400_p2 = scmp.lt.s32.totalorder %s3389_s18, 4 }
  0x9c   : > { %s4398_s28 = scalar_select %p3774_p9, 1, 0 }
  0x9d   : > { %p3787_p3 = pnand %p4400_p2, %p3706_p12  ;;  %s307_s26 = scalar_lea.vmem [#allocation2], %s2358_s0 }
  0x9e   : > { %s314_s8 = sshll.u32 %s307_s26, 4  ;;  %s2663_s17 = smul.u32 192, %s3540_s21  ;;  %s3792_s8 = int_to_ptr.vmem [resolvable:$true] %s314_s8 }
  0x9f   : > { %s304_s1 = scalar_lea.sflag [#allocation3], %s303_s24  ;;  %p3081_p1 = pneg %p3787_p3 }
  0xa1   : > { %s3781_s10 = scalar_lea.hbm %s4399_s22, %s2359_s27  ;;  %s3084_s13 = scalar_lea.hbm %s4399_s22, 256 }
  0xa2   : > { %s3079_s27 = scalar_lea.hbm %s3781_s10, 128  ;;  %p3085_p12 = scmp.lt.u32.totalorder %s3781_s10, %s4399_s22 }
  0xa3   : > { %p3080_p5 = scmp.ne.s32.totalorder %s3781_s10, %s3079_s27  ;;  %p3086_p2 = scmp.lt.u32.totalorder %s3084_s13, %s3079_s27 }
  0xa4   : > { %p3088_p8 = scmp.lt.u32.totalorder %s3079_s27, %s3781_s10 }
  0xa5   : > { %p3082_p11 = pnand %p3081_p1, %p3080_p5  ;;  %p3087_p9 = por %p3086_p2, %p3085_p12 }
  0xa7   : > { %p3083_p6 = pneg %p3082_p11  ;;  %p3089_p13 = por %p3088_p8, %p3087_p9 }
  0xa9   : > { %p3090_p10 = pnand %p3089_p13, %p3083_p6 }
  0xab   : > { %3093 = shalt.err (!%p3090_p10)
}
  0xac   : > { %s3094_s24 = scalar_lea.vmem %s3792_s8, 128  ;;  %s3398_s0 = smov [#allocation2]  }
  0xad   : > { %p3095_p5 = scmp.ne.s32.totalorder %s3792_s8, %s3094_s24  ;;  %s3099_s26 = sshll.u32 %s3398_s0, 4  ;;  %s3100_s26 = int_to_ptr.vmem [resolvable:$false] %s3099_s26 }
  0xae   : > { %s3101_s29 = scalar_lea.vmem %s3100_s26, 256  ;;  %p3102_p4 = scmp.lt.s32.totalorder %s3792_s8, %s3100_s26 }
  0xaf   : > { %p3097_p11 = pnand %p3095_p5, %p3081_p1  ;;  %p3103_p12 = scmp.lt.s32.totalorder %s3101_s29, %s3094_s24 }
  0xb1   : > { %p3098_p0 = pneg %p3097_p11  ;;  %p3104_p2 = por %p3103_p12, %p3102_p4 }
  0xb3   : > { %p3105_p9 = pnand %p3104_p2, %p3098_p0 }
  0xb5   : > { %3108 = shalt.err (!%p3105_p9)
}
  0xb6   : > { %2687 = dma.hbm_to_vmem [thread:$0]  (!%p3787_p3), %s3781_s10, 128, %s3792_s8, %s304_s1  }
  0xb7   : > { %s2664_s9 = smul.u32 3072, %s3381_s16  ;;  %s342_s13 = scalar_lea.vmem [#allocation7], %s2663_s17 }
  0xb8   : > { %s349_s27 = sshll.u32 %s342_s13, 4  ;;  %s4402_s0 = sld [smem:[#allocation45_spill]]  ;;  %s3827_s27 = int_to_ptr.vmem [resolvable:$true] %s349_s27 }
  0xbe   : > { %s3825_s26 = scalar_lea.hbm %s4402_s0, %s2664_s9  ;;  %s3114_s17 = scalar_lea.hbm %s4402_s0, 6144 }
  0xbf   : > { %s3109_s15 = scalar_lea.hbm %s3825_s26, 3072  ;;  %p3115_p8 = scmp.lt.u32.totalorder %s3825_s26, %s4402_s0 }
  0xc0   : > { %p3110_p4 = scmp.ne.s32.totalorder %s3825_s26, %s3109_s15  ;;  %p3116_p13 = scmp.lt.u32.totalorder %s3114_s17, %s3109_s15 }
  0xc1   : > { %p3118_p1 = scmp.lt.u32.totalorder %s3109_s15, %s3825_s26 }
  0xc2   : > { %p3112_p0 = pnand %p3110_p4, %p3566_p7  ;;  %p3117_p3 = por %p3116_p13, %p3115_p8 }
  0xc4   : > { %p3113_p10 = pneg %p3112_p0  ;;  %p3119_p6 = por %p3118_p1, %p3117_p3 }
  0xc6   : > { %p3120_p5 = pnand %p3119_p6, %p3113_p10 }
  0xc8   : > { %3123 = shalt.err (!%p3120_p5)
}
  0xc9   : > { %s3124_s29 = scalar_lea.vmem %s3827_s27, 3072  ;;  %s3399_s9 = smov [#allocation7]  }
  0xca   : > { %p3125_p11 = scmp.ne.s32.totalorder %s3827_s27, %s3124_s29  ;;  %s3129_s13 = sshll.u32 %s3399_s9, 4  ;;  %s3130_s13 = int_to_ptr.vmem [resolvable:$false] %s3129_s13 }
  0xcb   : > { %s3131_s19 = scalar_lea.vmem %s3130_s13, 6144  ;;  %p3132_p9 = scmp.lt.s32.totalorder %s3827_s27, %s3130_s13 }
  0xcc   : > { %p3127_p12 = pnand %p3125_p11, %p3566_p7  ;;  %p3133_p4 = scmp.lt.s32.totalorder %s3131_s19, %s3124_s29 }
  0xce   : > { %p3128_p2 = pneg %p3127_p12  ;;  %p3134_p0 = por %p3133_p4, %p3132_p9 }
  0xd0   : > { %p3135_p8 = pnand %p3134_p0, %p3128_p2 }
  0xd2   : > { %3138 = shalt.err (!%p3135_p8)
}
  0xd3   : > { %s3400_s30 = smov 192   ;;  %s4403_s15 = sld [smem:[#allocation34_spill]] }
  0xd4   : > { %s4404_s10 = sld [smem:[#allocation33_spill]]  ;;  %s3401_s8 = smov 12  }
  0xd5   : > { %s4407_s1 = sshll.u32 %s3686_s5, 4  ;;  %s383_s24 = scalar_lea.vmem [#allocation10], %s3540_s21  ;;  %s3854_s1 = int_to_ptr.vmem [resolvable:$true] %s4407_s1 }
  0xd6   : > { %s390_s29 = sshll.u32 %s383_s24, 4  ;;  %s3139_s9 = scalar_lea.hbm %s3675_s2, 16  ;;  %s391_s29 = int_to_ptr.vmem [resolvable:$true] %s390_s29 }
  0xd7   : > { %p3140_p13 = scmp.ne.s32.totalorder %s3675_s2, %s3139_s9  ;;  %s3144_s0 = scalar_lea.hbm %s4308_s4, 32 }
  0xd8   : > { %p3145_p6 = scmp.lt.u32.totalorder %s3675_s2, %s4308_s4  ;;  %p3146_p5 = scmp.lt.u32.totalorder %s3144_s0, %s3139_s9 }
  0xd9   : > { %p4405_p10 = scmp.ne.s32.totalorder %s4403_s15, 0  ;;  %p3142_p3 = pnand %p3140_p13, %p3566_p7 }
  0xda   : > { %s4406_s17 = scalar_lea.sflag [#allocation6], %s4404_s10  ;;  %p3147_p11 = por %p3146_p5, %p3145_p6 }
  0xdb   : > { %2693 = dma.hbm_to_vmem [thread:$0]  (!%p4405_p10), %s3825_s26, 3072, %s3827_s27, %s4406_s17, %s3400_s30, %s3400_s30, %s3401_s8  }
  0xdc   : > { %p3143_p1 = pneg %p3142_p3  ;;  %p3148_p12 = scmp.lt.u32.totalorder %s3139_s9, %s3675_s2 }
  0xde   : > { %p3149_p2 = por %p3148_p12, %p3147_p11 }
  0xe0   : > { %p3150_p9 = pnand %p3149_p2, %p3143_p1 }
  0xe2   : > { %3153 = shalt.err (!%p3150_p9)
}
  0xe3   : > { %s3154_s5 = scalar_lea.vmem %s391_s29, 16  ;;  %s3402_s21 = smov [#allocation10]  }
  0xe4   : > { %p3155_p4 = scmp.ne.s32.totalorder %s391_s29, %s3154_s5  ;;  %s3159_s27 = sshll.u32 %s3402_s21, 4  ;;  %s3160_s27 = int_to_ptr.vmem [resolvable:$false] %s3159_s27 }
  0xe5   : > { %s3161_s26 = scalar_lea.vmem %s3160_s27, 32  ;;  %p3162_p13 = scmp.lt.s32.totalorder %s391_s29, %s3160_s27 }
  0xe6   : > { %p3157_p0 = pnand %p3155_p4, %p3566_p7  ;;  %p3163_p3 = scmp.lt.s32.totalorder %s3161_s26, %s3154_s5 }
  0xe8   : > { %p3158_p8 = pneg %p3157_p0  ;;  %p3164_p10 = por %p3163_p3, %p3162_p13 }
  0xea   : > { %p3165_p5 = pnand %p3164_p10, %p3158_p8 }
  0xec   : > { %3168 = shalt.err (!%p3165_p5)
}
  0xed   : > { %p4408_p6 = scmp.ne.s32.totalorder %s4403_s15, 0  ;;  %s4409_s16 = scalar_lea.sflag [#allocation9], %s4404_s10 }
  0xee   : > { %s3169_s22 = scalar_lea.hbm %s3682_s25, 4096  ;;  %s3174_s8 = scalar_lea.hbm %s4310_s6, 8192 }
  0xef   : > { %2699 = dma.hbm_to_vmem [thread:$0]  (!%p4408_p6), %s3675_s2, 16, %s391_s29, %s4409_s16  }
  0xf0   : > { %p3170_p1 = scmp.ne.s32.totalorder %s3682_s25, %s3169_s22  ;;  %p3175_p10 = scmp.lt.u32.totalorder %s3682_s25, %s4310_s6 }
  0xf1   : > { %p3176_p2 = scmp.lt.u32.totalorder %s3174_s8, %s3169_s22  ;;  %p3178_p4 = scmp.lt.u32.totalorder %s3169_s22, %s3682_s25 }
  0xf2   : > { %p3172_p11 = pnand %p3170_p1, %p3566_p7 }
  0xf3   : > { %p3177_p9 = por %p3176_p2, %p3175_p10 }
  0xf4   : > { %p3173_p12 = pneg %p3172_p11 }
  0xf5   : > { %p3179_p0 = por %p3178_p4, %p3177_p9 }
  0xf7   : > { %p3180_p8 = pnand %p3179_p0, %p3173_p12 }
  0xf9   : > { %3183 = shalt.err (!%p3180_p8)
}
  0xfa   : > { %s3184_s2 = scalar_lea.vmem %s3854_s1, 4096  ;;  %s3403_s29 = smov [#allocation13]  }
  0xfb   : > { %p3185_p13 = scmp.ne.s32.totalorder %s3854_s1, %s3184_s2  ;;  %s3189_s9 = sshll.u32 %s3403_s29, 4  ;;  %s3190_s9 = int_to_ptr.vmem [resolvable:$false] %s3189_s9 }
  0xfc   : > { %s3191_s13 = scalar_lea.vmem %s3190_s9, 8192  ;;  %p3192_p1 = scmp.lt.s32.totalorder %s3854_s1, %s3190_s9 }
  0xfd   : > { %p3187_p3 = pnand %p3185_p13, %p3566_p7  ;;  %p3193_p11 = scmp.lt.s32.totalorder %s3191_s13, %s3184_s2 }
  0xff   : > { %p3188_p5 = pneg %p3187_p3  ;;  %p3194_p10 = por %p3193_p11, %p3192_p1 }
 0x101   : > { %p3195_p2 = pnand %p3194_p10, %p3188_p5 }
 0x103   : > { %3198 = shalt.err (!%p3195_p2)
}
 0x104   : > { %s4410_s19 = smov 4   ;;  %s4411_s5 = smov 64  }
 0x105   : > { %s4412_s21 = scalar_lea.sflag [#allocation12], %s4404_s10  ;;  %s4413_s23 = sld [smem:[#allocation35_spill]] }
 0x106   : > { %2705 = dma.hbm_to_vmem [thread:$0]  (!%p4408_p6), %s3682_s25, 4096, %s3854_s1, %s4412_s21, %s4411_s5, %s4411_s5, %s4410_s19  }
 0x10b   : > { %p4414_p7 = scmp.ne.s32.totalorder %s4413_s23, 0 }
 0x10c   : > { %s4415_s27 = sld [smem:[#allocation38_spill]] (!%p4414_p7)  ;;  %s3905_s26 = sand.u32 (!%p4414_p7), 1, %s3365_s12  }
 0x10d   : > { %441 = sbr.rel (%p4414_p7) target bundleno = 3253 (0xcb5), region = 48  ;;  %s2373_s16 = sshll.u32 (!%p4414_p7), %s3905_s26, 3 }
 0x10e   : > { %s444_s22 = scalar_lea.sflag (!%p4414_p7), [#allocation3], %s3905_s26  ;;  %s447_s15 = scalar_lea.vmem (!%p4414_p7), [#allocation2], %s2373_s16 }
 0x112   : > { %p4416_p12 = scmp.ne.s32.totalorder (!%p4414_p7), %s4415_s27, 0 }
 0x114   : > { %3312 = dma.done.wait (%p4416_p12), %s444_s22, 128  }
 0x115   : > { %3314 = vsyncadd (%p4416_p12), %s444_s22, 4294967168  ;;  %s4417_s10 = sld [smem:[#allocation26_spill]]  ;;  %s4418_s25 = sld [smem:[#allocation39_spill]] }
 0x116   : > { %s452_s1 = sand.u32 1, %s3690_s7  }
 0x117   : > { %s453_s30 = scalar_lea.sflag [#allocation6], %s452_s1 }
 0x11b   : > { %s3915_s0 = sand.u32 1, %s4417_s10   ;;  %p4419_p6 = scmp.ne.s32.totalorder %s4418_s25, 0 }
 0x11c   : > { %s455_s8 = scalar_lea.vmem [#allocation5], %s3915_s0 }
 0x11d   : > { %3316 = dma.done.wait (%p4419_p6), %s453_s30, 3088  }
 0x11e   : > { %3318 = vsyncadd (%p4419_p6), %s453_s30, 4294964208  ;;  %s2665_s17 = smul.u32 192, %s3915_s0  ;;  %s2374_s24 = sshll.u32 %s3915_s0, 6 }
 0x11f   : > { %s470_s29 = scalar_lea.sflag [#allocation9], %s452_s1  ;;  %s3926_s9 = scalar_lea.vmem [#allocation8], %s2374_s24 }
 0x120   : > { %s3924_s2 = scalar_lea.vmem [#allocation7], %s2665_s17 }
 0x121   : > { %3320 = dma.done.wait (%p4419_p6), %s470_s29, 1040  }
 0x122   : > { %3322 = vsyncadd (%p4419_p6), %s470_s29, 4294966256  ;;  %s2375_s7 = sshll.u32 %s3915_s0, 8  ;;  %s481_s13 = scalar_lea.vmem [#allocation10], %s3915_s0 }
 0x123   : > { %s487_s19 = scalar_lea.sflag [#allocation12], %s452_s1  ;;  %s3934_s5 = scalar_lea.vmem [#allocation11], %s2375_s7 }
 0x124   : > { %3324 = dma.done.wait (%p4419_p6), %s487_s19, 8192  }
 0x125   : > { %3326 = vsyncadd (%p4419_p6), %s487_s19, 4294959104  ;;  %s4420_s21 = sld [smem:[#allocation24_spill]]  ;;  %s3943_s22 = scalar_lea.vmem [#allocation13], %s2375_s7 }
 0x126   : > { %s3945_s10 = scalar_lea.vmem [#allocation14], %s2373_s16  ;;  %s4421_s17 = sld [smem:[#allocation29_spill]] }
 0x12b   : > { %s562_s23 = sand.u32 1, %s4420_s21  }
 0x12c   : > { %s2378_s27 = sshll.u32 %s562_s23, 5  ;;  %p2379_p9 = scmp.ne.s32.totalorder %s4421_s17, 0 }
 0x12d   : > { %s3947_s30 = scalar_lea.vmem [#allocation15], %s2378_s27  ;;  %v570_v0 = vld [vmem:[%s447_s15] sm:$0xff] (!%p2379_p9) }
 0x12e   : > { %569 = sbr.rel (%p2379_p9) target bundleno = 309 (0x135), region = 80  ;;  %571 = vst [vmem:[%s3945_s10] sm:$0xff] (!%p2379_p9), %v570_v0 }
 0x135 PF: > { %v3952_v1 = vld [vmem:[%s3945_s10] sm:$0xff]  ;;  %v3404_v4 = vmov 0.0   ;;  %v3405_v26 = vmov 0   ;;  %vm3406_vm0 = vmmov 0   ;;  %vm843_vm1 = vcmask 261120   ;;  %s3407_s16 = smov 96  }
 0x136   : > { %574 = vadd.xlane.f32.xlu0 %v3952_v1  ;;  %v2841_v2 = vld [vmem:[%s3924_s2 + $0x4] ss:$12 sps:$4 sm:$0xff]   ;;  %v2843_v3 = vld [vmem:[%s3924_s2] ss:$12 sps:$4 sm:$0xff]   ;;  %2575 = vmatprep.subr.bf16.mxu1 %v3404_v4  ;;  %v2844_v5 = vld [vmem:[%s3924_s2 + $0x8] ss:$12 sps:$4 sm:$0xff]   ;;  %v835_v53 = vlaneseq }
 0x137   : > { %v2845_v6 = vld [vmem:[%s3924_s2 + $0x1c] ss:$12 sps:$4 sm:$0xff]   ;;  %754 = vmatprep.subr.bf16.mxu0 %v2841_v2  ;;  %v2847_v7 = vld [vmem:[%s3924_s2 + $0x18] ss:$12 sps:$4 sm:$0xff]   ;;  %v2848_v8 = vld [vmem:[%s3924_s2 + $0x20] ss:$12 sps:$4 sm:$0xff]   ;;  %2576 = vmatpush3.bf16.msra.mxu1 %v2844_v5 }
 0x138   : > { %755 = vmatpush1.bf16.msra.mxu0 %v2843_v3  ;;  %v2849_v9 = vld [vmem:[%s3924_s2 + $0x34] ss:$12 sps:$4 sm:$0xff]   ;;  %2577 = vmatprep.subr.bf16.mxu1 %v3404_v4  ;;  %v2851_v10 = vld [vmem:[%s3924_s2 + $0x30] ss:$12 sps:$4 sm:$0xff]   ;;  %v2852_v11 = vld [vmem:[%s3924_s2 + $0x38] ss:$12 sps:$4 sm:$0xff]  }
 0x139   : > { %756 = vmatprep.subr.bf16.mxu0 %v2845_v6  ;;  %v2853_v16 = vld [vmem:[%s3924_s2 + $0x4c] ss:$12 sps:$4 sm:$0xff]   ;;  %v2855_v17 = vld [vmem:[%s3924_s2 + $0x48] ss:$12 sps:$4 sm:$0xff]   ;;  %v2856_v18 = vld [vmem:[%s3924_s2 + $0x50] ss:$12 sps:$4 sm:$0xff]   ;;  %786 = vmatprep.mubr.bf16.mxu0 %v3405_v26 }
 0x13a   : > { %v2857_v19 = vld [vmem:[%s3924_s2 + $0x64] ss:$12 sps:$4 sm:$0xff]   ;;  %v2859_v20 = vld [vmem:[%s3924_s2 + $0x60] ss:$12 sps:$4 sm:$0xff]   ;;  %v2860_v21 = vld [vmem:[%s3924_s2 + $0x68] ss:$12 sps:$4 sm:$0xff]   ;;  %2591 = vmatprep.mubr.msk.bf16.mxu1 %vm3406_vm0, %v3404_v4 }
 0x13b   : > { %2578 = vmatpush3.bf16.msra.mxu1 %v2848_v8  ;;  %v2861_v22 = vld [vmem:[%s3924_s2 + $0x7c] ss:$12 sps:$4 sm:$0xff]   ;;  %v2863_v23 = vld [vmem:[%s3924_s2 + $0x78] ss:$12 sps:$4 sm:$0xff]   ;;  %v2864_v24 = vld [vmem:[%s3924_s2 + $0x80] ss:$12 sps:$4 sm:$0xff]  }
 0x13c   : > { %757 = vmatpush1.bf16.msra.mxu0 %v2847_v7  ;;  %2579 = vmatprep.subr.bf16.mxu1 %v3404_v4  ;;  %v2865_v25 = vld [vmem:[%s3924_s2 + $0x94] ss:$12 sps:$4 sm:$0xff]   ;;  %v2867_v27 = vld [vmem:[%s3924_s2 + $0x90] ss:$12 sps:$4 sm:$0xff]   ;;  %v2868_v28 = vld [vmem:[%s3924_s2 + $0x98] ss:$12 sps:$4 sm:$0xff]  }
 0x13d   : > { %758 = vmatprep.subr.bf16.mxu0 %v2849_v9  ;;  %v2869_v29 = vld [vmem:[%s3924_s2 + $0xac] ss:$12 sps:$4 sm:$0xff]   ;;  %v2871_v30 = vld [vmem:[%s3924_s2 + $0xa8] ss:$12 sps:$4 sm:$0xff]   ;;  %v2872_v31 = vld [vmem:[%s3924_s2 + $0xb0] ss:$12 sps:$4 sm:$0xff]  }
 0x13e   : > { %v2380_v36 = vld [vmem:[%s455_s8] ss:$0 sm:$0xff]  ;;  %s3408_s15 = smov 32   ;;  %vm909_vm2 = vcmask 1043456   ;;  %v4011_v54 = vshrl.u32 %v835_v53, 7  ;;  %v4013_v55 = vand.u32 127, %v835_v53 }
 0x13f   : > { %2580 = vmatpush3.bf16.msra.mxu1 %v2852_v11  ;;  %vm892_vm4 = vcmask 64512   ;;  %s3409_s25 = smov 64   ;;  %vm1312_vm5 = vcmask 523264   ;;  %vm1314_vm6 = vcmask 785408   ;;  %s4422_s1 = sld [smem:[#allocation30_spill]] }
 0x140   : > { %759 = vmatpush1.bf16.msra.mxu0 %v2851_v10  ;;  %2581 = vmatprep.subr.bf16.mxu1 %v3404_v4  ;;  %vm839_vm3 = vcmp.le.s32.totalorder %v4013_v55, %v4011_v54  ;;  %s4423_s0 = sld [smem:[#allocation29_spill]]  ;;  %s2112_s7 = sshll.u32 %s3947_s30, 4  ;;  %s4188_s7 = int_to_ptr.vmem [resolvable:$true] %s2112_s7 }
 0x141   : > { %760 = vmatprep.subr.bf16.mxu0 %v2853_v16  ;;  %s4192_s27 = scalar_lea.sflag [#allocation16], %s562_s23  ;;  %p4426_p0 = scmp.ne.s32.totalorder %s4397_s20, 0 }
 0x142   : > { %s3410_s17 = smov [#allocation15]  }
 0x143   : > { %2582 = vmatpush3.bf16.msra.mxu1 %v2856_v18 }
 0x144   : > { %761 = vmatpush1.bf16.msra.mxu0 %v2855_v17  ;;  %2583 = vmatprep.subr.bf16.mxu1 %v3404_v4 }
 0x145   : > { %762 = vmatprep.subr.bf16.mxu0 %v2857_v19  ;;  %s2489_s24 = sshll.u32 %s4422_s1, 2 }
 0x146   : > { %s2490_s2 = sshll.u32 %s4423_s0, 3 }
 0x147   : > { %2584 = vmatpush3.bf16.msra.mxu1 %v2860_v21  ;;  %s2109_s29 = sadd.s32 %s2490_s2, %s2489_s24 }
 0x148   : > { %763 = vmatpush1.bf16.msra.mxu0 %v2859_v20  ;;  %2585 = vmatprep.subr.bf16.mxu1 %v3404_v4 }
 0x149   : > { %764 = vmatprep.subr.bf16.mxu0 %v2861_v22 }
 0x14b   : > { %2586 = vmatpush3.bf16.msra.mxu1 %v2864_v24 }
 0x14c   : > { %765 = vmatpush1.bf16.msra.mxu0 %v2863_v23  ;;  %2587 = vmatprep.subr.bf16.mxu1 %v3404_v4 }
 0x14d   : > { %766 = vmatprep.subr.bf16.mxu0 %v2865_v25 }
 0x14f   : > { %2588 = vmatpush3.bf16.msra.mxu1 %v2868_v28 }
 0x150   : > { %767 = vmatpush1.bf16.msra.mxu0 %v2867_v27  ;;  %2589 = vmatprep.subr.bf16.mxu1 %v3404_v4 }
 0x151   : > { %768 = vmatprep.subr.bf16.mxu0 %v2869_v29 }
 0x153   : > { %2590 = vmatpush3.bf16.msra.mxu1 %v2872_v31 }
 0x154   : > { %769 = vmatpush1.bf16.msra.mxu0 %v2871_v30  ;;  %2595 = vmatprep.subr.bf16.mxu1 %v3404_v4 }
 0x155   : > { %2619 = vmatprep.subr.bf16.mxu0 %v3404_v4 }
 0x1c3   : > { %v575_v12 = vpop.xlane.xlu0 %574 }
 0x1c4   : > { %v577_v13 = vmul.f32 0.0078125, %v575_v12 }
 0x1c6   : > { %v578_v14 = vsub.f32 %v3952_v1, %v577_v13 }
 0x1c8   : > { %v579_v15 = vmul.f32 %v578_v14, %v578_v14 }
 0x1ca   : > { %580 = vadd.xlane.f32.xlu0 %v579_v15 }
 0x257   : > { %v581_v32 = vpop.xlane.xlu0 %580 }
 0x258   : > { %v582_v33 = vmul.f32 0.0078125, %v581_v32 }
 0x25a   : > { %v583_v34 = vadd.f32 1e-05, %v582_v33 }
 0x25c   : > { %2961 = vrsqrt.f32 %v583_v34 }
 0x266   : > { %v2962_v35 = vpop.eup %2961 }
 0x267   : > { %v585_v37 = vmul.f32 %v2962_v35, %v578_v14 }
 0x269   : > { %v592_v38 = vmul.f32 %v2380_v36, %v585_v37 }
 0x26b   : > { %v593_v39 = vpack.c.bf16 %v592_v38, %v592_v38 }
 0x26d   : > { %787 = vmatmul.mubr.bf16.vlgmr.msra.gmra.mrb[0].mxu0 %v593_v39  ;;  %2592 = vmatmul.mubr.bf16.vlgmr.msra.gmra.mrb[0].mxu1 %v593_v39 }
 0x26e   : > { %2597 = vmatprep.mubr.msk.bf16.mxu1 %vm3406_vm0, %v3404_v4  ;;  %2621 = vmatprep.mubr.msk.bf16.mxu0 %vm3406_vm0, %v3404_v4 }
 0x340   : > { %v788_v40 = vpop.f32.mrb[0].mxu0  ;;  %v829_v41 = vpop.f32.mrb[0].mxu1 }
 0x341   : > { %v790_v42 = vpop.f32.mrb[1].mxu0  ;;  %v2593_v43 = vpop.f32.mrb[1].mxu1  ;;  %v4002_v50 = vpack.c.bf16 %v829_v41, %v829_v41  ;;  %v840_v51 = vpack.c.bf16 %v788_v40, %v788_v40 }
 0x342   : > { %v841_v44 = vpack.c.bf16 %v790_v42, %v790_v42  ;;  %v792_v45 = vpop.f32.mrb[2].mxu0  ;;  %v832_v46 = vpop.f32.mrb[2].mxu1 }
 0x343   : > { %v793_v47 = vpop.f32.mrb[3].mxu0  ;;  %v2594_v48 = vpop.f32.mrb[3].mxu1  ;;  %v911_v52 = vsel %vm909_vm2, %v4002_v50, 0 }
 0x344   : > { %957 = vrot.lane.b32.xlu0 %v841_v44, %s3407_s16  ;;  %v848_v49 = vsel %vm843_vm1, %v841_v44, 0 }
 0x345   : > { %2596 = vmatpush3.bf16.xpose.msra.mxu1 %v848_v49 }
 0x346   : > { %2601 = vmatprep.subr.bf16.mxu1 %v3404_v4 }
 0x348   : > { %1184 = vrot.lane.b32.xlu0 %v841_v44, %s3408_s15 }
 0x34c   : > { %2598 = vmatmul.mubr.msk.bf16.vlgmr.msra.gmra.mrb[4].mxu1 %vm843_vm1, %v840_v51 }
 0x34d   : > { %2602 = vmatpush3.bf16.msra.mxu1 %v911_v52  ;;  %2603 = vmatprep.mubr.msk.bf16.mxu1 %vm3406_vm0, %v3404_v4 }
 0x34e   : > { %2607 = vmatprep.subr.bf16.mxu1 %v3404_v4 }
 0x3b6   : > { %v958_v8 = vpop.permute.xlu0 %957 }
 0x3b7   : > { %v963_v15 = vsel %vm843_vm1, %v958_v8, 0 }
 0x3ba   : > { %v1185_v13 = vpop.permute.xlu0 %1184 }
 0x3bb   : > { %v1190_v17 = vsel %vm843_vm1, %v1185_v13, 0 }
 0x41f   : > { %v884_v56 = vpop.f32.mrb[4].mxu1 }
 0x420   : > { %v890_v57 = vmul.f32 0.17677669, %v884_v56  ;;  %v2599_v58 = vpop.f32.mrb[5].mxu1 }
 0x421   : > { %v887_v59 = vpop.f32.mrb[6].mxu1 }
 0x422   : > { %v2600_v60 = vpop.f32.mrb[7].mxu1  ;;  %v891_v61 = vsel %vm839_vm3, %v890_v57, -inf }
 0x423   : > { %v893_v62 = vsel %vm892_vm4, %v891_v61, -inf }
 0x424   : > { %894 = vmax.xlane.f32.xlu1 %v893_v62 }
 0x4b1   : > { %v895_v63 = vpop.xlane.xlu1 %894 }
 0x4b2   : > { %v896_v0 = vsub.f32 %v891_v61, %v895_v63 }
 0x4b4   : > { %v897_v2 = vmul.f32 1.442695, %v896_v0 }
 0x4b6   : > { %2963 = vpow2.f32 %v897_v2 }
 0x4c0   : > { %v2964_v3 = vpop.eup %2963 }
 0x4c1   : > { %v899_v5 = vsel %vm892_vm4, %v2964_v3, 0.0 }
 0x4c2   : > { %900 = vadd.xlane.f32.xlu1 %v899_v5 }
 0x4d3   : > { %954 = vrot.lane.b32.xlu1 %v840_v51, %s3407_s16 }
 0x4d7   : > { %1071 = vrot.lane.b32.xlu1 %v841_v44, %s3409_s25 }
 0x4db   : > { %1069 = vrot.lane.b32.xlu1 %v840_v51, %s3409_s25 }
 0x4df   : > { %1182 = vrot.lane.b32.xlu1 %v840_v51, %s3408_s15 }
 0x54f   : > { %v901_v6 = vpop.xlane.xlu1 %900 }
 0x550   : > { %2965 = vrcp.f32 %v901_v6 }
 0x553   : > { %v955_v7 = vpop.permute.xlu1 %954 }
 0x557   : > { %v1072_v9 = vpop.permute.xlu1 %1071 }
 0x558   : > { %v1077_v10 = vsel %vm843_vm1, %v1072_v9, 0 }
 0x559   : > { %2620 = vmatpush3.bf16.xpose.msra.mxu0 %v1077_v10 }
 0x55a   : > { %v2966_v11 = vpop.eup %2965  ;;  %2631 = vmatprep.subr.bf16.mxu0 %v3404_v4 }
 0x55b   : > { %v903_v12 = vmul.f32 %v2966_v11, %v2964_v3  ;;  %v1070_v16 = vpop.permute.xlu1 %1069 }
 0x55d   : > { %1295 = vst.msk [vmem:[%s3947_s30] sm:$0xff] %vm892_vm4, %v903_v12  ;;  %v905_v14 = vpack.c.bf16 %v903_v12, %v903_v12 }
 0x55f   : > { %2604 = vmatmul.mubr.msk.bf16.vlgmr.msra.gmra.mrb[8].mxu1 %vm892_vm4, %v905_v14  ;;  %v1183_v18 = vpop.permute.xlu1 %1182 }
 0x560   : > { %2608 = vmatpush3.bf16.xpose.msra.mxu1 %v963_v15  ;;  %2622 = vmatmul.mubr.msk.bf16.vlgmr.msra.gmra.mrb[4].mxu0 %vm843_vm1, %v1070_v16  ;;  %v2873_v16 = vld [vmem:[%s3926_s9] sm:$0xff]  }
 0x561   : > { %2632 = vmatpush3.bf16.xpose.msra.mxu0 %v1190_v17  ;;  %2609 = vmatprep.mubr.msk.bf16.mxu1 %vm3406_vm0, %v3404_v4  ;;  %v2874_v17 = vld [vmem:[%s3926_s9 + $0x8] sm:$0xff]  }
 0x562   : > { %2633 = vmatprep.mubr.msk.bf16.mxu0 %vm3406_vm0, %v3404_v4  ;;  %2613 = vmatprep.subr.bf16.mxu1 %v3404_v4 }
 0x563   : > { %2643 = vmatprep.subr.bf16.mxu0 %v3404_v4 }
 0x567   : > { %2610 = vmatmul.mubr.msk.bf16.vlgmr.msra.gmra.mrb[12].mxu1 %vm843_vm1, %v955_v7 }
 0x568   : > { %2634 = vmatmul.mubr.msk.bf16.vlgmr.msra.gmra.mrb[8].mxu0 %vm843_vm1, %v1183_v18  ;;  %2615 = vmatprep.mubr.msk.bf16.mxu1 %vm3406_vm0, %v3404_v4  ;;  %v2875_v18 = vld [vmem:[%s3926_s9 + $0x10] sm:$0xff]  }
 0x569   : > { %2659 = vmatprep.mubr.msk.bf16.mxu0 %vm3406_vm0, %v3404_v4  ;;  %2644 = vmatpush3.bf16.msra.mxu0 %v2873_v16  ;;  %v2925_v16 = vld [vmem:[%s3934_s5 + $0xe4] ss:$16 sps:$4 sm:$0xff]  }
 0x56a   : > { %2645 = vmatprep.subr.bf16.mxu0 %v3404_v4 }
 0x56d   : > { %2646 = vmatpush3.bf16.msra.mxu0 %v2874_v17  ;;  %v2928_v17 = vld [vmem:[%s3934_s5 + $0xec] ss:$16 sps:$4 sm:$0xff]  }
 0x56e   : > { %2647 = vmatprep.subr.bf16.mxu0 %v3404_v4 }
 0x571   : > { %2648 = vmatpush3.bf16.msra.mxu0 %v2875_v18  ;;  %v2923_v18 = vld [vmem:[%s3934_s5 + $0xe0] ss:$16 sps:$4 sm:$0xff]  }
 0x572   : > { %2649 = vmatprep.subr.bf16.mxu0 %v3404_v4 }
 0x632   : > { %v4046_v19 = vpop.f32.mrb[8].mxu1 }
 0x633   : > { %v2605_v20 = vpop.f32.mrb[9].mxu1  ;;  %v1113_v21 = vpop.f32.mrb[4].mxu0 }
 0x634   : > { %v1119_v22 = vmul.f32 0.17677669, %v1113_v21  ;;  %v950_v23 = vpop.f32.mrb[10].mxu1  ;;  %v2623_v24 = vpop.f32.mrb[5].mxu0  ;;  %v2876_v20 = vld [vmem:[%s3926_s9 + $0x18] sm:$0xff]   ;;  %v2877_v21 = vld [vmem:[%s3926_s9 + $0x20] sm:$0xff]  }
 0x635   : > { %v2606_v25 = vpop.f32.mrb[11].mxu1  ;;  %v1116_v27 = vpop.f32.mrb[6].mxu0  ;;  %2650 = vmatpush3.bf16.msra.mxu0 %v2876_v20  ;;  %v2879_v23 = vld [vmem:[%s3926_s9 + $0x30] sm:$0xff]   ;;  %v2926_v20 = vld [vmem:[%s3934_s5 + $0xe8] ss:$16 sps:$4 sm:$0xff]  }
 0x636   : > { %v2624_v28 = vpop.f32.mrb[7].mxu0  ;;  %v1120_v29 = vsel %vm839_vm3, %v1119_v22, -inf  ;;  %2651 = vmatprep.subr.bf16.mxu0 %v3404_v4  ;;  %v2878_v22 = vld [vmem:[%s3926_s9 + $0x28] sm:$0xff]  }
 0x637   : > { %v1121_v30 = vsel %vm892_vm4, %v1120_v29, -inf }
 0x638   : > { %1122 = vmax.xlane.f32.xlu1 %v1121_v30 }
 0x639   : > { %2652 = vmatpush3.bf16.msra.mxu0 %v2877_v21  ;;  %v2929_v21 = vld [vmem:[%s3943_s22 + $0x40] sm:$0xff]  }
 0x63a   : > { %v999_v31 = vpop.f32.mrb[12].mxu1  ;;  %2653 = vmatprep.subr.bf16.mxu0 %v3404_v4 }
 0x63b   : > { %v1005_v32 = vmul.f32 0.17677669, %v999_v31  ;;  %v2611_v33 = vpop.f32.mrb[13].mxu1  ;;  %v1226_v34 = vpop.f32.mrb[8].mxu0 }
 0x63c   : > { %v1232_v35 = vmul.f32 0.17677669, %v1226_v34  ;;  %v1002_v36 = vpop.f32.mrb[14].mxu1  ;;  %v2635_v37 = vpop.f32.mrb[9].mxu0 }
 0x63d   : > { %v2612_v38 = vpop.f32.mrb[15].mxu1  ;;  %v1229_v39 = vpop.f32.mrb[10].mxu0  ;;  %v1006_v40 = vsel %vm839_vm3, %v1005_v32, -inf  ;;  %2654 = vmatpush3.bf16.msra.mxu0 %v2878_v22  ;;  %v2930_v22 = vld [vmem:[%s3943_s22 + $0xc0] sm:$0xff]  }
 0x63e   : > { %v2636_v41 = vpop.f32.mrb[11].mxu0  ;;  %v1007_v42 = vsel %vm892_vm4, %v1006_v40, -inf  ;;  %v1233_v43 = vsel %vm839_vm3, %v1232_v35, -inf  ;;  %2655 = vmatprep.subr.bf16.mxu0 %v3404_v4 }
 0x63f   : > { %1008 = vmax.xlane.f32.xlu0 %v1007_v42  ;;  %v1234_v44 = vsel %vm892_vm4, %v1233_v43, -inf }
 0x641   : > { %2656 = vmatpush3.bf16.msra.mxu0 %v2879_v23 }
 0x642   : > { %2657 = vmatprep.subr.bf16.mxu0 %v3404_v4 }
 0x643   : > { %1235 = vmax.xlane.f32.xlu0 %v1234_v44 }
 0x6c5   : > { %v1123_v45 = vpop.xlane.xlu1 %1122 }
 0x6c6   : > { %v1124_v46 = vsub.f32 %v1120_v29, %v1123_v45  ;;  %v2880_v29 = vld [vmem:[%s3926_s9 + $0x38] sm:$0xff]   ;;  %s2491_s9 = sshll.u32 %s2109_s29, 7 }
 0x6c7   : > { %2658 = vmatpush3.bf16.msra.mxu0 %v2880_v29 }
 0x6c8   : > { %v1125_v47 = vmul.f32 1.442695, %v1124_v46 }
 0x6ca   : > { %2967 = vpow2.f32 %v1125_v47 }
 0x6cc   : > { %v1009_v48 = vpop.xlane.xlu0 %1008 }
 0x6cd   : > { %v1010_v49 = vsub.f32 %v1006_v40, %v1009_v48  ;;  %v2881_v48 = vld [vmem:[%s3934_s5] ss:$16 sps:$4 sm:$0xff]  }
 0x6cf   : > { %v1011_v51 = vmul.f32 1.442695, %v1010_v49  ;;  %v2883_v49 = vld [vmem:[%s3934_s5 + $0x4] ss:$16 sps:$4 sm:$0xff]  }
 0x6d0   : > { %v1236_v52 = vpop.xlane.xlu0 %1235 }
 0x6d1   : > { %2969 = vpow2.f32 %v1011_v51  ;;  %v1237_v53 = vsub.f32 %v1233_v43, %v1236_v52  ;;  %v2884_v51 = vld [vmem:[%s3934_s5 + $0x8] ss:$16 sps:$4 sm:$0xff]   ;;  %v2886_v52 = vld [vmem:[%s3934_s5 + $0xc] ss:$16 sps:$4 sm:$0xff]  }
 0x6d2   : > { %1675 = vmatprep.subr.bf16.mxu0 %v2886_v52  ;;  %v2951_v52 = vld [vmem:[%s3943_s22 + $0x28] sm:$0xff]  }
 0x6d3   : > { %v1238_v56 = vmul.f32 1.442695, %v1237_v53  ;;  %v2889_v53 = vld [vmem:[%s3934_s5 + $0x24] ss:$16 sps:$4 sm:$0xff]  }
 0x6d4   : > { %v2968_v57 = vpop.eup %2967 }
 0x6d5   : > { %2971 = vpow2.f32 %v1238_v56  ;;  %v1127_v58 = vsel %vm892_vm4, %v2968_v57, 0.0  ;;  %v2890_v56 = vld [vmem:[%s3934_s5 + $0x28] ss:$16 sps:$4 sm:$0xff]  }
 0x6d6   : > { %1128 = vadd.xlane.f32.xlu0 %v1127_v58  ;;  %v2898_v58 = vld [vmem:[%s3934_s5 + $0x4c] ss:$16 sps:$4 sm:$0xff]  }
 0x6db   : > { %v2970_v54 = vpop.eup %2969 }
 0x6dc   : > { %v1013_v55 = vsel %vm892_vm4, %v2970_v54, 0.0 }
 0x6dd   : > { %1014 = vadd.xlane.f32.xlu0 %v1013_v55  ;;  %v2896_v55 = vld [vmem:[%s3934_s5 + $0x48] ss:$16 sps:$4 sm:$0xff]  }
 0x6df   : > { %v2972_v59 = vpop.eup %2971 }
 0x6e0   : > { %v1240_v60 = vsel %vm892_vm4, %v2972_v59, 0.0 }
 0x6e1   : > { %1241 = vadd.xlane.f32.xlu1 %v1240_v60 }
 0x6f2   : > { %1134 = vrot.lane.b32.xlu1 %v4002_v50, %s3409_s25 }
 0x6f3   : > { %1021 = vrot.lane.b32.xlu0 %v4002_v50, %s3407_s16 }
 0x6f6   : > { %1247 = vrot.lane.b32.xlu1 %v4002_v50, %s3408_s15 }
 0x763   : > { %v1129_v61 = vpop.xlane.xlu0 %1128 }
 0x764   : > { %2973 = vrcp.f32 %v1129_v61 }
 0x76a   : > { %v1015_v62 = vpop.xlane.xlu0 %1014 }
 0x76b   : > { %2975 = vrcp.f32 %v1015_v62 }
 0x76e   : > { %v2974_v63 = vpop.eup %2973  ;;  %v1242_v0 = vpop.xlane.xlu1 %1241 }
 0x76f   : > { %v1022_v2 = vpop.permute.xlu0 %1021  ;;  %v1131_v3 = vmul.f32 %v2974_v63, %v2968_v57  ;;  %2977 = vrcp.f32 %v1242_v0  ;;  %v2895_v57 = vld [vmem:[%s3934_s5 + $0x44] ss:$16 sps:$4 sm:$0xff]   ;;  %v2904_v0 = vld [vmem:[%s3934_s5 + $0x6c] ss:$16 sps:$4 sm:$0xff]  }
 0x770   : > { %v1027_v5 = vsel %vm909_vm2, %v1022_v2, 0  ;;  %v2901_v63 = vld [vmem:[%s3934_s5 + $0x64] ss:$16 sps:$4 sm:$0xff]   ;;  %v2899_v2 = vld [vmem:[%s3934_s5 + $0x60] ss:$16 sps:$4 sm:$0xff]  }
 0x771   : > { %2614 = vmatpush3.bf16.msra.mxu1 %v1027_v5  ;;  %1297 = vst.msk [vmem:[%s3947_s30 + $0x10] sm:$0xff] %vm892_vm4, %v1131_v3  ;;  %v1133_v13 = vpack.c.bf16 %v1131_v3, %v1131_v3  ;;  %v2902_v3 = vld [vmem:[%s3934_s5 + $0x68] ss:$16 sps:$4 sm:$0xff]   ;;  %v2905_v5 = vld [vmem:[%s3934_s5 + $0x80] ss:$16 sps:$4 sm:$0xff]  }
 0x772   : > { %2625 = vmatprep.subr.bf16.mxu1 %v3404_v4  ;;  %v1135_v7 = vpop.permute.xlu1 %1134 }
 0x773   : > { %v1140_v11 = vsel %vm909_vm2, %v1135_v7, 0  ;;  %v2910_v7 = vld [vmem:[%s3934_s5 + $0x8c] ss:$16 sps:$4 sm:$0xff]  }
 0x775   : > { %v2976_v6 = vpop.eup %2975 }
 0x776   : > { %v1017_v50 = vmul.f32 %v2976_v6, %v2970_v54  ;;  %v1248_v12 = vpop.permute.xlu1 %1247  ;;  %v2893_v54 = vld [vmem:[%s3934_s5 + $0x40] ss:$16 sps:$4 sm:$0xff]   ;;  %v2907_v6 = vld [vmem:[%s3934_s5 + $0x84] ss:$16 sps:$4 sm:$0xff]  }
 0x777   : > { %v1253_v14 = vsel %vm909_vm2, %v1248_v12, 0  ;;  %v2919_v12 = vld [vmem:[%s3934_s5 + $0xc4] ss:$16 sps:$4 sm:$0xff]  }
 0x778   : > { %1296 = vst.msk [vmem:[%s3947_s30 + $0x8] sm:$0xff] %vm892_vm4, %v1017_v50  ;;  %v1019_v8 = vpack.c.bf16 %v1017_v50, %v1017_v50  ;;  %v2908_v50 = vld [vmem:[%s3934_s5 + $0x88] ss:$16 sps:$4 sm:$0xff]  }
 0x779   : > { %v2978_v9 = vpop.eup %2977 }
 0x77a   : > { %v1244_v10 = vmul.f32 %v2978_v9, %v2972_v59  ;;  %2616 = vmatmul.mubr.msk.bf16.vlgmr.msra.gmra.mrb[16].mxu1 %vm892_vm4, %v1019_v8  ;;  %v2913_v8 = vld [vmem:[%s3934_s5 + $0xa4] ss:$16 sps:$4 sm:$0xff]   ;;  %v2916_v9 = vld [vmem:[%s3934_s5 + $0xac] ss:$16 sps:$4 sm:$0xff]  }
 0x77b   : > { %2626 = vmatpush3.bf16.msra.mxu1 %v1140_v11  ;;  %2627 = vmatprep.mubr.msk.bf16.mxu1 %vm3406_vm0, %v3404_v4  ;;  %v2914_v11 = vld [vmem:[%s3934_s5 + $0xa8] ss:$16 sps:$4 sm:$0xff]  }
 0x77c   : > { %1298 = vst.msk [vmem:[%s3947_s30 + $0x18] sm:$0xff] %vm892_vm4, %v1244_v10  ;;  %2637 = vmatprep.subr.bf16.mxu1 %v3404_v4  ;;  %v1246_v15 = vpack.c.bf16 %v1244_v10, %v1244_v10  ;;  %v2911_v10 = vld [vmem:[%s3934_s5 + $0xa0] ss:$16 sps:$4 sm:$0xff]   ;;  %s3203_s30 = sshll.u32 %s3410_s17, 4  ;;  %s3204_s30 = int_to_ptr.vmem [resolvable:$false] %s3203_s30 }
 0x77d   : > { %p3206_p3 = scmp.lt.s32.totalorder %s4188_s7, %s3204_s30 }
 0x782   : > { %2628 = vmatmul.mubr.msk.bf16.vlgmr.msra.gmra.mrb[20].mxu1 %vm892_vm4, %v1133_v13  ;;  %v2922_v13 = vld [vmem:[%s3934_s5 + $0xcc] ss:$16 sps:$4 sm:$0xff]  }
 0x783   : > { %2638 = vmatpush3.bf16.msra.mxu1 %v1253_v14  ;;  %2639 = vmatprep.mubr.msk.bf16.mxu1 %vm3406_vm0, %v3404_v4  ;;  %v2917_v14 = vld [vmem:[%s3934_s5 + $0xc0] ss:$16 sps:$4 sm:$0xff]  }
 0x784   : > { %1634 = vmatprep.subr.bf16.mxu1 %v2883_v49  ;;  %v2949_v49 = vld [vmem:[%s3943_s22 + $0x68] sm:$0xff]  }
 0x78a   : > { %2640 = vmatmul.mubr.msk.bf16.vlgmr.msra.gmra.mrb[24].mxu1 %vm892_vm4, %v1246_v15  ;;  %v2920_v15 = vld [vmem:[%s3934_s5 + $0xc8] ss:$16 sps:$4 sm:$0xff]  }
 0x78b   : > { %1666 = vmatprep.mubr.bf16.mxu1 %v3405_v26  ;;  %1635 = vmatpush1.bf16.msra.mxu1 %v2881_v48  ;;  %v2948_v48 = vld [vmem:[%s3943_s22 + $0xa0] sm:$0xff]  }
 0x78c   : > { %1636 = vmatprep.subr.bf16.mxu1 %v2889_v53  ;;  %v2952_v53 = vld [vmem:[%s3943_s22 + $0xa8] sm:$0xff]  }
 0x84d   : > { %v1063_v24 = vpop.f32.mrb[16].mxu1 }
 0x84e   : > { %1300 = vrot.lane.b32.xlu1 %v1063_v24, %s3408_s15  ;;  %v2617_v25 = vpop.f32.mrb[17].mxu1 }
 0x84f   : > { %v1066_v27 = vpop.f32.mrb[18].mxu1 }
 0x850   : > { %v2618_v28 = vpop.f32.mrb[19].mxu1 }
 0x851   : > { %v2421_v28 = vld [vmem:[%s481_s13] ss:$0 sm:$0xff] }
 0x855   : > { %v1176_v30 = vpop.f32.mrb[20].mxu1 }
 0x856   : > { %1304 = vrot.lane.b32.xlu0 %v1176_v30, %s3409_s25  ;;  %v2629_v31 = vpop.f32.mrb[21].mxu1 }
 0x857   : > { %v1179_v32 = vpop.f32.mrb[22].mxu1  ;;  %v2931_v31 = vld [vmem:[%s3943_s22] sm:$0xff]  }
 0x858   : > { %v2630_v33 = vpop.f32.mrb[23].mxu1  ;;  %v2932_v32 = vld [vmem:[%s3943_s22 + $0x80] sm:$0xff]  }
 0x85d   : > { %v1289_v34 = vpop.f32.mrb[24].mxu1 }
 0x85e   : > { %1308 = vrot.lane.b32.xlu1 %v1289_v34, %s3407_s16  ;;  %v2641_v35 = vpop.f32.mrb[25].mxu1  ;;  %v2933_v34 = vld [vmem:[%s3943_s22 + $0x48] sm:$0xff]   ;;  %s3205_s16 = scalar_lea.vmem %s3204_s30, 1024 }
 0x85f   : > { %v1292_v36 = vpop.f32.mrb[26].mxu1  ;;  %v2934_v35 = vld [vmem:[%s3943_s22 + $0xc8] sm:$0xff]  }
 0x860   : > { %v2642_v37 = vpop.f32.mrb[27].mxu1  ;;  %v2935_v36 = vld [vmem:[%s3943_s22 + $0x8] sm:$0xff]  }
 0x861   : > { %v2936_v37 = vld [vmem:[%s3943_s22 + $0x88] sm:$0xff]  }
 0x8c0   : > { %v1301_v38 = vpop.permute.xlu1 %1300 }
 0x8c1   : > { %v1311_v4 = vsel %vm843_vm1, %v4046_v19, %v1301_v38  ;;  %v2937_v38 = vld [vmem:[%s3943_s22 + $0x50] sm:$0xff]  }
 0x8c8   : > { %v1305_v39 = vpop.permute.xlu0 %1304 }
 0x8c9   : > { %v1313_v40 = vsel %vm1312_vm5, %v1311_v4, %v1305_v39  ;;  %v2938_v39 = vld [vmem:[%s3943_s22 + $0xd0] sm:$0xff]  }
 0x8ca   : > { %v2939_v4 = vld [vmem:[%s3943_s22 + $0x10] sm:$0xff]  }
 0x8d0   : > { %v1309_v41 = vpop.permute.xlu1 %1308 }
 0x8d1   : > { %v1315_v42 = vsel %vm1314_vm6, %v1313_v40, %v1309_v41  ;;  %v2940_v40 = vld [vmem:[%s3943_s22 + $0x90] sm:$0xff]   ;;  %v2941_v41 = vld [vmem:[%s3943_s22 + $0x58] sm:$0xff]  }
 0x8d2   : > { %v1316_v43 = vpack.c.bf16 %v1315_v42, %v1315_v42  ;;  %v2942_v42 = vld [vmem:[%s3943_s22 + $0xd8] sm:$0xff]  }
 0x8d4   : > { %2660 = vmatmul.mubr.bf16.vlgmr.msra.gmra.mrb[12].mxu0 %v1316_v43  ;;  %v2943_v43 = vld [vmem:[%s3943_s22 + $0x18] sm:$0xff]  }
 0x8d5   : > { %1707 = vmatprep.mubr.bf16.mxu0 %v3405_v26  ;;  %v2892_v26 = vld [vmem:[%s3934_s5 + $0x2c] ss:$16 sps:$4 sm:$0xff]   ;;  %1676 = vmatpush1.bf16.msra.mxu0 %v2884_v51 }
 0x8d6   : > { %1677 = vmatprep.subr.bf16.mxu0 %v2892_v26  ;;  %v2950_v51 = vld [vmem:[%s3943_s22 + $0xe8] sm:$0xff]   ;;  %v2953_v26 = vld [vmem:[%s3943_s22 + $0x70] sm:$0xff]  }
 0x8d9   : > { %1678 = vmatpush1.bf16.msra.mxu0 %v2890_v56  ;;  %v2955_v56 = vld [vmem:[%s3943_s22 + $0x30] sm:$0xff]  }
 0x8da   : > { %1679 = vmatprep.subr.bf16.mxu0 %v2898_v58  ;;  %v2957_v58 = vld [vmem:[%s3943_s22 + $0x78] sm:$0xff]  }
 0x8dd   : > { %1680 = vmatpush1.bf16.msra.mxu0 %v2896_v55  ;;  %v2959_v55 = vld [vmem:[%s3943_s22 + $0x38] sm:$0xff]  }
 0x8de   : > { %1681 = vmatprep.subr.bf16.mxu0 %v2904_v0 }
 0x8e1   : > { %1682 = vmatpush1.bf16.msra.mxu0 %v2902_v3 }
 0x8e2   : > { %1683 = vmatprep.subr.bf16.mxu0 %v2910_v7 }
 0x8e5   : > { %1684 = vmatpush1.bf16.msra.mxu0 %v2908_v50 }
 0x8e6   : > { %1685 = vmatprep.subr.bf16.mxu0 %v2916_v9 }
 0x8e9   : > { %1686 = vmatpush1.bf16.msra.mxu0 %v2914_v11 }
 0x8ea   : > { %1687 = vmatprep.subr.bf16.mxu0 %v2922_v13 }
 0x8ed   : > { %1688 = vmatpush1.bf16.msra.mxu0 %v2920_v15 }
 0x8ee   : > { %1689 = vmatprep.subr.bf16.mxu0 %v2928_v17 }
 0x8f1   : > { %1690 = vmatpush1.bf16.msra.mxu0 %v2926_v20 }
 0x8f2   : > { %2553 = vmatprep.subr.bf16.mxu0 %v2930_v22 }
 0x9a7   : > { %v1415_v44 = vpop.f32.mrb[12].mxu0 }
 0x9a8   : > { %v4110_v45 = vadd.f32 %v1415_v44, %v3952_v1  ;;  %v2661_v46 = vpop.f32.mrb[13].mxu0  ;;  %v2887_v1 = vld [vmem:[%s3934_s5 + $0x20] ss:$16 sps:$4 sm:$0xff]   ;;  %v2944_v44 = vld [vmem:[%s3943_s22 + $0x98] sm:$0xff]   ;;  %s4425_s5 = sld [smem:[#allocation49_spill]] }
 0x9a9   : > { %v1418_v47 = vpop.f32.mrb[14].mxu0  ;;  %1637 = vmatpush1.bf16.msra.mxu1 %v2887_v1  ;;  %v2945_v46 = vld [vmem:[%s3943_s22 + $0x60] sm:$0xff]   ;;  %v2954_v1 = vld [vmem:[%s3943_s22 + $0xf0] sm:$0xff]  }
 0x9aa   : > { %1423 = vadd.xlane.f32.xlu0 %v4110_v45  ;;  %v2662_v19 = vpop.f32.mrb[15].mxu0  ;;  %1638 = vmatprep.subr.bf16.mxu1 %v2895_v57  ;;  %v2946_v47 = vld [vmem:[%s3943_s22 + $0xe0] sm:$0xff]   ;;  %v2956_v57 = vld [vmem:[%s3943_s22 + $0xb0] sm:$0xff]  }
 0x9ab   : > { %v2947_v19 = vld [vmem:[%s3943_s22 + $0x20] sm:$0xff]  }
 0x9ad   : > { %1639 = vmatpush1.bf16.msra.mxu1 %v2893_v54  ;;  %v2958_v54 = vld [vmem:[%s3943_s22 + $0xf8] sm:$0xff]  }
 0x9ae   : > { %1640 = vmatprep.subr.bf16.mxu1 %v2901_v63  ;;  %s4186_s21 = scalar_lea.hbm %s4425_s5, %s2491_s9 }
 0x9b1   : > { %1641 = vmatpush1.bf16.msra.mxu1 %v2899_v2 }
 0x9b2   : > { %1642 = vmatprep.subr.bf16.mxu1 %v2907_v6 }
 0x9b5   : > { %1643 = vmatpush1.bf16.msra.mxu1 %v2905_v5 }
 0x9b6   : > { %1644 = vmatprep.subr.bf16.mxu1 %v2913_v8 }
 0x9b9   : > { %1645 = vmatpush1.bf16.msra.mxu1 %v2911_v10 }
 0x9ba   : > { %1646 = vmatprep.subr.bf16.mxu1 %v2919_v12 }
 0x9bd   : > { %1647 = vmatpush1.bf16.msra.mxu1 %v2917_v14 }
 0x9be   : > { %1648 = vmatprep.subr.bf16.mxu1 %v2925_v16 }
 0x9c1   : > { %1649 = vmatpush1.bf16.msra.mxu1 %v2923_v18 }
 0x9c2   : > { %2531 = vmatprep.subr.bf16.mxu1 %v2929_v21 }
 0xa37   : > { %v1424_v59 = vpop.xlane.xlu0 %1423 }
 0xa38   : > { %v1425_v60 = vmul.f32 0.0078125, %v1424_v59  ;;  %v2960_v59 = vld [vmem:[%s3943_s22 + $0xb8] sm:$0xff]   ;;  %s3199_s22 = scalar_lea.vmem %s4188_s7, 512 }
 0xa39   : > { %p3200_p4 = scmp.ne.s32.totalorder %s4188_s7, %s3199_s22  ;;  %p3207_p5 = scmp.lt.s32.totalorder %s3205_s16, %s3199_s22 }
 0xa3a   : > { %v1426_v61 = vsub.f32 %v4110_v45, %v1425_v60 }
 0xa3b   : > { %p3201_p8 = pnand %p3200_p4, %p4426_p0  ;;  %p3208_p1 = por %p3207_p5, %p3206_p3 }
 0xa3c   : > { %v1427_v62 = vmul.f32 %v1426_v61, %v1426_v61 }
 0xa3d   : > { %p3202_p13 = pneg %p3201_p8 }
 0xa3e   : > { %1428 = vadd.xlane.f32.xlu1 %v1427_v62 }
 0xa3f   : > { %p3209_p11 = pnand %p3208_p1, %p3202_p13 }
 0xacb   : > { %v1429_v23 = vpop.xlane.xlu1 %1428 }
 0xacc   : > { %v1430_v24 = vmul.f32 0.0078125, %v1429_v23 }
 0xace   : > { %v1431_v25 = vadd.f32 1e-05, %v1430_v24 }
 0xad0   : > { %2979 = vrsqrt.f32 %v1431_v25 }
 0xada   : > { %v2980_v27 = vpop.eup %2979 }
 0xadb   : > { %v1433_v29 = vmul.f32 %v2980_v27, %v1426_v61 }
 0xadd   : > { %v1440_v30 = vmul.f32 %v2421_v28, %v1433_v29 }
 0xadf   : > { %v1441_v33 = vpack.c.bf16 %v1440_v30, %v1440_v30 }
 0xae1   : > { %1667 = vmatmul.mubr.bf16.vlgmr.msra.gmra.mrb[28].mxu1 %v1441_v33  ;;  %1708 = vmatmul.mubr.bf16.vlgmr.msra.gmra.mrb[16].mxu0 %v1441_v33 }
 0xae2   : > { %2532 = vmatpush3.bf16.msra.mxu1 %v2931_v31  ;;  %2554 = vmatpush3.bf16.msra.mxu0 %v2932_v32 }
 0xae3   : > { %2533 = vmatprep.subr.bf16.mxu1 %v2933_v34  ;;  %2555 = vmatprep.subr.bf16.mxu0 %v2934_v35 }
 0xae6   : > { %2534 = vmatpush3.bf16.msra.mxu1 %v2935_v36  ;;  %2556 = vmatpush3.bf16.msra.mxu0 %v2936_v37 }
 0xae7   : > { %2535 = vmatprep.subr.bf16.mxu1 %v2937_v38  ;;  %2557 = vmatprep.subr.bf16.mxu0 %v2938_v39 }
 0xaea   : > { %2536 = vmatpush3.bf16.msra.mxu1 %v2939_v4  ;;  %2558 = vmatpush3.bf16.msra.mxu0 %v2940_v40 }
 0xaeb   : > { %2537 = vmatprep.subr.bf16.mxu1 %v2941_v41  ;;  %2559 = vmatprep.subr.bf16.mxu0 %v2942_v42 }
 0xaee   : > { %2538 = vmatpush3.bf16.msra.mxu1 %v2943_v43  ;;  %2560 = vmatpush3.bf16.msra.mxu0 %v2944_v44 }
 0xaef   : > { %2539 = vmatprep.subr.bf16.mxu1 %v2945_v46  ;;  %2561 = vmatprep.subr.bf16.mxu0 %v2946_v47 }
 0xaf2   : > { %2540 = vmatpush3.bf16.msra.mxu1 %v2947_v19  ;;  %2562 = vmatpush3.bf16.msra.mxu0 %v2948_v48 }
 0xaf3   : > { %2541 = vmatprep.subr.bf16.mxu1 %v2949_v49  ;;  %2563 = vmatprep.subr.bf16.mxu0 %v2950_v51 }
 0xaf6   : > { %2542 = vmatpush3.bf16.msra.mxu1 %v2951_v52  ;;  %2564 = vmatpush3.bf16.msra.mxu0 %v2952_v53 }
 0xaf7   : > { %2543 = vmatprep.subr.bf16.mxu1 %v2953_v26  ;;  %2565 = vmatprep.subr.bf16.mxu0 %v2954_v1 }
 0xafa   : > { %2544 = vmatpush3.bf16.msra.mxu1 %v2955_v56  ;;  %2566 = vmatpush3.bf16.msra.mxu0 %v2956_v57 }
 0xafb   : > { %2545 = vmatprep.subr.bf16.mxu1 %v2957_v58  ;;  %2567 = vmatprep.subr.bf16.mxu0 %v2958_v54 }
 0xafe   : > { %2546 = vmatpush3.bf16.msra.mxu1 %v2959_v55  ;;  %2568 = vmatpush3.bf16.msra.mxu0 %v2960_v59 }
 0xbb4   : > { %v1668_v60 = vpop.f32.mrb[28].mxu1  ;;  %v1709_v61 = vpop.f32.mrb[16].mxu0 }
 0xbb5   : > { %v1720_v62 = vmul.f32 0.70710677, %v1668_v60  ;;  %v1722_v63 = vmul.f32 0.70710677, %v1709_v61  ;;  %v1670_v0 = vpop.f32.mrb[29].mxu1  ;;  %v1711_v2 = vpop.f32.mrb[17].mxu0 }
 0xbb6   : > { %v1721_v3 = vmul.f32 0.70710677, %v1670_v0  ;;  %v1672_v5 = vpop.f32.mrb[30].mxu1  ;;  %v1713_v6 = vpop.f32.mrb[18].mxu0  ;;  %v1723_v50 = vmul.f32 0.70710677, %v1711_v2 }
 0xbb7   : > { %2981 = verf.f32 %v1720_v62  ;;  %v1673_v7 = vpop.f32.mrb[31].mxu1  ;;  %v1714_v8 = vpop.f32.mrb[19].mxu0  ;;  %v1716_v13 = vmul.f32 0.5, %v1668_v60  ;;  %v1718_v16 = vmul.f32 0.5, %v1709_v61  ;;  %v1717_v17 = vmul.f32 0.5, %v1670_v0 }
 0xbb8   : > { %2983 = verf.f32 %v1722_v63  ;;  %v1719_v21 = vmul.f32 0.5, %v1711_v2 }
 0xbb9   : > { %2985 = verf.f32 %v1721_v3 }
 0xbba   : > { %2987 = verf.f32 %v1723_v50 }
 0xbc1   : > { %v2982_v9 = vpop.eup %2981 }
 0xbc2   : > { %v2984_v10 = vpop.eup %2983  ;;  %v1728_v11 = vadd.f32 1.0, %v2982_v9 }
 0xbc3   : > { %v2986_v12 = vpop.eup %2985  ;;  %v1730_v14 = vadd.f32 1.0, %v2984_v10 }
 0xbc4   : > { %v2988_v15 = vpop.eup %2987  ;;  %v1729_v18 = vadd.f32 1.0, %v2986_v12  ;;  %v1732_v20 = vmul.f32 %v1728_v11, %v1716_v13 }
 0xbc5   : > { %v1731_v22 = vadd.f32 1.0, %v2988_v15  ;;  %v1734_v23 = vmul.f32 %v1730_v14, %v1718_v16 }
 0xbc6   : > { %v1733_v24 = vmul.f32 %v1729_v18, %v1717_v17  ;;  %v1736_v28 = vpack.c.bf16 %v1732_v20, %v1732_v20 }
 0xbc7   : > { %v1735_v25 = vmul.f32 %v1731_v22, %v1719_v21  ;;  %v1738_v30 = vpack.c.bf16 %v1734_v23, %v1734_v23 }
 0xbc8   : > { %v1737_v27 = vpack.c.bf16 %v1733_v24, %v1733_v24 }
 0xbc9   : > { %v1739_v29 = vpack.c.bf16 %v1735_v25, %v1735_v25 }
 0xbca   : > { %2028 = vmatprep.mubr.bf16.mxu1 %v1737_v27 }
 0xbcb   : > { %2068 = vmatprep.mubr.bf16.mxu0 %v1739_v29  ;;  %2029 = vmatmul.mubr.bf16.vlgmr.msra.gmra.mrb[32].mxu1 %v1736_v28 }
 0xbcc   : > { %2069 = vmatmul.mubr.bf16.vlgmr.msra.gmra.mrb[20].mxu0 %v1738_v30 }
 0xbcd   : > { %3212 = shalt.err (!%p3209_p11)
}
 0xbce   : > { %s3213_s23 = scalar_lea.hbm %s4186_s21, 512  ;;  %s3217_s0 = scalar_lea.hbm %s4425_s5, 2048 }
 0xbcf   : > { %p3214_p10 = scmp.ne.s32.totalorder %s4186_s21, %s3213_s23  ;;  %p3218_p12 = scmp.lt.u32.totalorder %s4186_s21, %s4425_s5 }
 0xbd0   : > { %p3219_p6 = scmp.lt.u32.totalorder %s3217_s0, %s3213_s23  ;;  %p3221_p4 = scmp.lt.u32.totalorder %s3213_s23, %s4186_s21 }
 0xbd1   : > { %p3215_p2 = pnand %p3214_p10, %p4426_p0 }
 0xbd2   : > { %p3220_p9 = por %p3219_p6, %p3218_p12 }
 0xbd3   : > { %p3216_p7 = pneg %p3215_p2 }
 0xbd4   : > { %p3222_p8 = por %p3221_p4, %p3220_p9 }
 0xbd6   : > { %p3223_p13 = pnand %p3222_p8, %p3216_p7 }
 0xbd8   : > { %3226 = shalt.err (!%p3223_p13)
}
 0xbd9   : > { %s3411_s2 = smov 128   ;;  %s3412_s29 = smov 8  }
 0xbda   : > { %2681 = dma.vmem_to_hbm [thread:$0]  (%p4426_p0), %s4188_s7, 512, %s4186_s21, %s4192_s27, %s3411_s2, %s3411_s2, %s3412_s29  }
 0xbdb   : > { %s2488_s9 = sshll.u32 %s4422_s1, 7  ;;  %s2097_s13 = sshll.u32 %s3945_s10, 4  ;;  %s4224_s13 = int_to_ptr.vmem [resolvable:$true] %s2097_s13 }
 0xbdc   : > { %s4427_s19 = sld [smem:[#allocation48_spill]]  ;;  %s2079_s27 = scalar_lea.sflag [#allocation4], %s3905_s26 }
 0xbdd   : > { %s3227_s22 = scalar_lea.vmem %s4224_s13, 128  ;;  %p4428_p3 = scmp.ne.s32.totalorder %s4391_s3, 0 }
 0xbde   : > { %p3228_p0 = scmp.ne.s32.totalorder %s4224_s13, %s3227_s22  ;;  %s3413_s1 = smov [#allocation14]  }
 0xbdf   : > { %s3231_s17 = sshll.u32 %s3413_s1, 4  ;;  %s3232_s17 = int_to_ptr.vmem [resolvable:$false] %s3231_s17 }
 0xbe0   : > { %p3229_p5 = pnand %p3228_p0, %p4428_p3  ;;  %s3233_s30 = scalar_lea.vmem %s3232_s17, 256 }
 0xbe1   : > { %p3234_p11 = scmp.lt.s32.totalorder %s4224_s13, %s3232_s17  ;;  %p3235_p10 = scmp.lt.s32.totalorder %s3233_s30, %s3227_s22 }
 0xbe2   : > { %s4222_s21 = scalar_lea.hbm %s4427_s19, %s2488_s9  ;;  %p3230_p1 = pneg %p3229_p5 }
 0xbe3   : > { %p3236_p2 = por %p3235_p10, %p3234_p11 }
 0xbe5   : > { %p3237_p7 = pnand %p3236_p2, %p3230_p1 }
 0xc9e   : > { %v2547_v31 = vpop.f32.mrb[32].mxu1 }
 0xc9f   : > { %v2569_v32 = vpop.f32.mrb[20].mxu0  ;;  %v2548_v33 = vpop.f32.mrb[33].mxu1 }
 0xca0   : > { %v2549_v34 = vadd.f32 %v2548_v33, %v2547_v31  ;;  %v2570_v35 = vpop.f32.mrb[21].mxu0  ;;  %v2550_v36 = vpop.f32.mrb[34].mxu1 }
 0xca1   : > { %v2571_v37 = vadd.f32 %v2570_v35, %v2569_v32  ;;  %v2572_v38 = vpop.f32.mrb[22].mxu0  ;;  %v2551_v39 = vpop.f32.mrb[35].mxu1 }
 0xca2   : > { %v2573_v4 = vpop.f32.mrb[23].mxu0 }
 0xca3   : > { %v2071_v40 = vadd.f32 %v2571_v37, %v2549_v34 }
 0xca5   : > { %v2076_v41 = vadd.f32 %v2071_v40, %v4110_v45 }
 0xca7   : > { %2077 = vst [vmem:[%s3945_s10] sm:$0xff] %v2076_v41 }
 0xca8   : > { %3240 = shalt.err (!%p3237_p7)
}
 0xca9   : > { %s3241_s26 = scalar_lea.hbm %s4222_s21, 128  ;;  %s3245_s23 = scalar_lea.hbm %s4427_s19, 256 }
 0xcaa   : > { %p3242_p12 = scmp.ne.s32.totalorder %s4222_s21, %s3241_s26  ;;  %p3246_p4 = scmp.lt.u32.totalorder %s4222_s21, %s4427_s19 }
 0xcab   : > { %p3247_p8 = scmp.lt.u32.totalorder %s3245_s23, %s3241_s26  ;;  %p3249_p0 = scmp.lt.u32.totalorder %s3241_s26, %s4222_s21 }
 0xcac   : > { %p3243_p6 = pnand %p3242_p12, %p4428_p3 }
 0xcad   : > { %p3248_p13 = por %p3247_p8, %p3246_p4 }
 0xcae   : > { %p3244_p9 = pneg %p3243_p6 }
 0xcaf   : > { %p3250_p5 = por %p3249_p0, %p3248_p13 }
 0xcb1   : > { %p3251_p1 = pnand %p3250_p5, %p3244_p9 }
 0xcb3   : > { %3254 = shalt.err (!%p3251_p1)
}
 0xcb4   : > { %2680 = dma.vmem_to_hbm [thread:$0]  (%p4428_p3), %s4224_s13, 128, %s4222_s21, %s2079_s27  }
 0xcb5 PF: > { %p2714_p11 = scmp.ge.s32.totalorder %s3389_s18, 2  ;;  %s2127_s0 = sand.u32 1, %s3361_s11  }
 0xcb6   : > { %p4429_p10 = scmp.ne.s32.totalorder %s4395_s14, 0  ;;  %s2128_s8 = scalar_lea.sflag [#allocation4], %s2127_s0 }
 0xcb8   : > { %p2707_p2 = pnand %p2714_p11, %p4429_p10 }
 0xcba   : > { %3328 = dma.done.wait (!%p2707_p2), %s2128_s8, 128  }
 0xcbb   : > { %3330 = vsyncadd (!%p2707_p2), %s2128_s8, 4294967168  ;;  %s4430_s24 = sld [smem:[#allocation23_spill]]  ;;  %p4431_p7 = scmp.ne.s32.totalorder %s4398_s28, 0 }
 0xcbd   : > { %p2710_p12 = pnand %p2714_p11, %p4431_p7 }
 0xcc1   : > { %s2136_s2 = sand.u32 1, %s4430_s24  }
 0xcc2   : > { %s2137_s3 = scalar_lea.sflag [#allocation16], %s2136_s2 }
 0xcc3   : > { %3332 = dma.done.wait (!%p2710_p12), %s2137_s3, 512  }
 0xcc4   : > { %3334 = vsyncadd (!%p2710_p12), %s2137_s3, 4294966784  ;;  %s37_s18 = sadd.s32 1, %s3389_s18   ;;  %s4433_s27 = sld [smem:[#allocation24_spill]] }
 0xcc5   : > { %p4257_p3 = scmp.ge.s32.totalorder %s37_s18, 6   ;;  %s4434_s28 = sld [smem:[#allocation25_spill]] }
 0xcc6   : > { %s4435_s11 = sld [smem:[#allocation42_spill]]  ;;  %s4436_s30 = sld [smem:[#allocation26_spill]] }
 0xcc7   : > { %s4437_s9 = sld [smem:[#allocation27_spill]]  ;;  %s4438_s10 = sld [smem:[#allocation40_spill]] }
 0xcc8   : > { %s4439_s14 = sld [smem:[#allocation28_spill]]  ;;  %s4440_s13 = sld [smem:[#allocation41_spill]] }
 0xcc9   : > { %s4441_s20 = sld [smem:[#allocation31_spill]]  ;;  %s4442_s15 = sld [smem:[#allocation32_spill]] }
 0xcca   : > { %s4443_s16 = sld [smem:[#allocation36_spill]]  ;;  %s4444_s17 = sld [smem:[#allocation37_spill]] }
 0xccb   :  { %36 = sbr.rel (!%p4257_p3) target bundleno = 26 (0x1a), region = 186 }
 0xccc   : > { %s4446_s29 = smov %s4435_s11  ;;  %s4447_s11 = smov %s3365_s12 }
 0xcce   : > { %s4448_s12 = smov %s4439_s14 }
 0xccf   : > { %s4449_s14 = smov %s4441_s20 }
 0xcd2   :  { %2142 = vsyncpa [#allocation3], 1 }
 0xcd3   :  { %2144 = vsyncpa [#allocation3 + $0x1], 1 }
 0xcd4   :  { %2145 = vsyncpa [#allocation6], 1 }
 0xcd5   :  { %2147 = vsyncpa [#allocation6 + $0x1], 1 }
 0xcd6   :  { %2148 = vsyncpa [#allocation9], 1 }
 0xcd7   :  { %2150 = vsyncpa [#allocation9 + $0x1], 1 }
 0xcd8   :  { %2151 = vsyncpa [#allocation12], 1 }
 0xcd9   :  { %2153 = vsyncpa [#allocation12 + $0x1], 1 }
 0xcda   :  { %2154 = vsyncpa [#allocation4], 1 }
 0xcdb   :  { %2156 = vsyncpa [#allocation4 + $0x1], 1 }
 0xcdc   :  { %2157 = vsyncpa [#allocation16], 1 }
 0xcdd   :  { %2159 = vsyncpa [#allocation16 + $0x1], 1 }

</bundles_post_ra>
